<compile_context>
chip_gen: v7x
topology: tpu7x:2x2x1
jax: 0.10.0
libtpu: 0.0.40
codegen_flags: <defaults>
</compile_context>

<pallas_src>
import math
from functools import partial

import jax
import jax.numpy as jnp
from jax.experimental import pallas as pl
from jax.experimental.pallas import tpu as pltpu


def _round_up(x, m):
    return (x + m - 1) // m * m


# ---------------------------------------------------------------------------
# Kernel
# ---------------------------------------------------------------------------
def simple_kernel(embs_ref, feats_ref,
                  wenc_ref, benc_ref, wdec_ref, bdec_ref,
                  score_ref, recon_ref, *, inv_feat):
    """Fused SimplE forward for one batch tile."""
    f32 = jnp.float32

    e = embs_ref[...].astype(f32)            # (4, TB, Dp)
    hh, tt, r, r_inv = e[0], e[1], e[2], e[3]
    tb = hh.shape[0]

    # (2, TB, Fp) -> (2*TB, Fp): contiguous leading-dim collapse (no copy,
    # TB is a multiple of 8 so the (8,128) tiling is unchanged).
    x = feats_ref[...].astype(f32).reshape(2 * tb, feats_ref.shape[-1])

    # Fused autoencoder over heads + tails: one encode and one decode matmul
    # (weights pre-normalized / pre-transposed outside the kernel).
    z = jnp.tanh(jnp.dot(x, wenc_ref[...],
                         preferred_element_type=f32) + benc_ref[...])
    recon = jnp.dot(z, wdec_ref[...],
                    preferred_element_type=f32) + bdec_ref[...]
    # Per-example reconstruction MSE over the TRUE feature width; padded
    # columns of x / recon are exactly zero so they add nothing to the sum.
    err = jnp.sum((recon - x) ** 2, axis=1) * inv_feat            # (2*TB,)

    h_unite, t_unite = z[:tb], z[tb:]                             # (TB, Dp)
    h_err, t_err = err[:tb], err[tb:]                             # (TB,)

    # scores1 = sum(hh * r * tt); scores2 = sum(t_unite * r_inv * h_unite)
    s1 = jnp.sum(hh * r * tt, axis=1)                             # (TB,)
    s2 = jnp.sum(t_unite * r_inv * h_unite, axis=1)               # (TB,)
    score = jnp.clip(0.5 * (s1 + s2), -20.0, 20.0)

    # Lane-dense stores: one (1, TB) row per grid step.
    score_ref[...] = score.reshape(1, tb)
    recon_ref[...] = (h_err + t_err).reshape(1, tb)


# ---------------------------------------------------------------------------
# Wrapper
# ---------------------------------------------------------------------------
def simple_forward(params, heads, rels, tails, *, feat_dim, block_b=512):
    """Embedding gathers in plain JAX, fused batch-tiled math in Pallas."""
    B = heads.shape[0]
    Dp = params["ent_h_embs"].shape[1]
    Fp = params["ae_feats"].shape[1]

    tb = min(block_b, _round_up(B, 128))          # batch tile (multiple of 128)
    Bp = _round_up(B, tb)
    pad = Bp - B
    heads_p = jnp.pad(heads, (0, pad))
    rels_p = jnp.pad(rels, (0, pad))
    tails_p = jnp.pad(tails, (0, pad))

    # bf16 streaming halves the kernel's HBM read traffic; math is f32 inside.
    bf16 = jnp.bfloat16
    take = lambda t, idx: jnp.take(t, idx, axis=0).astype(bf16)

    # Stack the gathered streams into two slabs so each grid step needs only
    # two input DMAs and no in-kernel concatenate.
    embs = jnp.stack([take(params["ent_h_embs"], heads_p),   # hh
                      take(params["ent_h_embs"], tails_p),   # tt
                      take(params["rel_embs"], rels_p),      # r
                      take(params["rel_inv_embs"], rels_p)], # r_inv
                     axis=0)                                  # (4, Bp, Dp)
    feats = jnp.stack([take(params["ae_feats"], heads_p),    # hx
                       take(params["ae_feats"], tails_p)],   # tx
                      axis=0)                                 # (2, Bp, Fp)

    grid = (Bp // tb,)
    kernel = partial(simple_kernel, inv_feat=1.0 / float(feat_dim))

    score2d, recon2d = pl.pallas_call(
        kernel,
        out_shape=(
            jax.ShapeDtypeStruct((1, Bp), jnp.float32),
            jax.ShapeDtypeStruct((1, Bp), jnp.float32),
        ),
        grid=grid,
        in_specs=[
            pl.BlockSpec((4, tb, Dp), lambda i: (0, i, 0)),   # embedding slab
            pl.BlockSpec((2, tb, Fp), lambda i: (0, i, 0)),   # feature slab
            pl.BlockSpec((Fp, Dp), lambda i: (0, 0)),         # w_enc_t (resident)
            pl.BlockSpec((1, Dp), lambda i: (0, 0)),          # b_enc   (resident)
            pl.BlockSpec((Dp, Fp), lambda i: (0, 0)),         # w_dec_t (resident)
            pl.BlockSpec((1, Fp), lambda i: (0, 0)),          # b_dec   (resident)
        ],
        out_specs=(
            pl.BlockSpec((1, tb), lambda i: (0, i)),
            pl.BlockSpec((1, tb), lambda i: (0, i)),
        ),
        compiler_params=pltpu.CompilerParams(
            dimension_semantics=("parallel",)),
    )(embs, feats,
      params["w_enc_t"], params["b_enc"], params["w_dec_t"], params["b_dec"])

    return score2d[0, :B], recon2d[0, :B]


# ---------------------------------------------------------------------------
# Parameter init / prep
# ---------------------------------------------------------------------------
def init_params(key, num_ent, num_rel, emb_dim, feat_dim):
    """Raw parameters in torch layout (Linear weights are [out, in])."""
    sqrt_size = 6.0 / math.sqrt(emb_dim)
    ks = jax.random.split(key, 6)
    uni = lambda k, shape, a: jax.random.uniform(
        k, shape, jnp.float32, minval=-a, maxval=a)
    return {
        "ent_h_embs": uni(ks[0], (num_ent, emb_dim), sqrt_size),
        "rel_embs": uni(ks[1], (num_rel, emb_dim), sqrt_size),
        "rel_inv_embs": uni(ks[2], (num_rel, emb_dim), sqrt_size),
        # assumed autoencoder parameters
        "ae_feats": uni(ks[3], (num_ent, feat_dim), 1.0),
        "w_enc": uni(ks[4], (emb_dim, feat_dim), 1.0 / math.sqrt(feat_dim)),
        "b_enc": jnp.zeros((1, emb_dim), jnp.float32),
        "w_dec": uni(ks[5], (feat_dim, emb_dim), 1.0 / math.sqrt(emb_dim)),
        "b_dec": jnp.zeros((1, feat_dim), jnp.float32),
    }


def prepare_params(raw):
    """One-time, batch-invariant prep hoisted out of the kernel:
       encoder-weight row normalization (rsqrt + eps), weight pre-transpose,
       and zero-padding of emb/feat dims up to multiples of 128."""
    D = raw["ent_h_embs"].shape[1]
    F = raw["ae_feats"].shape[1]
    Dp = _round_up(D, 128)
    Fp = _round_up(F, 128)

    def pad2(a, rows, cols):
        return jnp.pad(a, ((0, rows - a.shape[0]), (0, cols - a.shape[1])))

    # torch: weight.data.div_(weight.norm(p=2, dim=1, keepdim=True))
    w_enc = raw["w_enc"]                                          # (D, F)
    inv_norm = jax.lax.rsqrt(
        jnp.maximum(jnp.sum(w_enc * w_enc, axis=1, keepdims=True), 1e-24))
    w_enc_n = w_enc * inv_norm

    return {
        "ent_h_embs": pad2(raw["ent_h_embs"], raw["ent_h_embs"].shape[0], Dp),
        "rel_embs": pad2(raw["rel_embs"], raw["rel_embs"].shape[0], Dp),
        "rel_inv_embs": pad2(raw["rel_inv_embs"],
                             raw["rel_inv_embs"].shape[0], Dp),
        "ae_feats": pad2(raw["ae_feats"], raw["ae_feats"].shape[0], Fp),
        "w_enc_t": pad2(w_enc_n.T, Fp, Dp),       # x @ w_enc_t
        "b_enc": pad2(raw["b_enc"], 1, Dp),
        "w_dec_t": pad2(raw["w_dec"].T, Dp, Fp),  # z @ w_dec_t
        "b_dec": pad2(raw["b_dec"], 1, Fp),
    }


# ---------------------------------------------------------------------------
# Pure-JAX reference (same prepped params / bf16-quantized streams)
# ---------------------------------------------------------------------------
def reference_forward(params, heads, rels, tails, *, feat_dim):
    cast = lambda t, idx: jnp.take(t, idx, axis=0).astype(
        jnp.bfloat16).astype(jnp.float32)
    hh = cast(params["ent_h_embs"], heads)
    tt = cast(params["ent_h_embs"], tails)
    r = cast(params["rel_embs"], rels)
    r_inv = cast(params["rel_inv_embs"], rels)
    hx = cast(params["ae_feats"], heads)
    tx = cast(params["ae_feats"], tails)
    hp = jax.lax.Precision.HIGHEST

    def ae(x):
        z = jnp.tanh(jnp.dot(x, params["w_enc_t"], precision=hp)
                     + params["b_enc"])
        rec = jnp.dot(z, params["w_dec_t"], precision=hp) + params["b_dec"]
        return z, jnp.sum((rec - x) ** 2, axis=1) / float(feat_dim)

    h_u, h_e = ae(hx)
    t_u, t_e = ae(tx)
    s1 = jnp.sum(hh * r * tt, axis=1)
    s2 = jnp.sum(t_u * r_inv * h_u, axis=1)
    return jnp.clip(0.5 * (s1 + s2), -20.0, 20.0), h_e + t_e


# ---------------------------------------------------------------------------
if __name__ == "__main__":
    num_ent, num_rel, emb_dim, feat_dim, batch = 32, 8, 32, 16, 8

    key = jax.random.PRNGKey(0)
    kp, kh, kr, kt = jax.random.split(key, 4)
    raw = init_params(kp, num_ent, num_rel, emb_dim, feat_dim)
    params = prepare_params(raw)

    heads = jax.random.randint(kh, (batch,), 0, num_ent, dtype=jnp.int32)
    rels = jax.random.randint(kr, (batch,), 0, num_rel, dtype=jnp.int32)
    tails = jax.random.randint(kt, (batch,), 0, num_ent, dtype=jnp.int32)

    fwd = jax.jit(partial(simple_forward, feat_dim=feat_dim))
    score, recon_err = fwd(params, heads, rels, tails)
    jax.block_until_ready((score, recon_err))

    ref_score, ref_recon = jax.jit(
        partial(reference_forward, feat_dim=feat_dim))(params, heads, rels, tails)

    assert score.shape == (batch,) and recon_err.shape == (batch,)
    assert bool(jnp.all(jnp.isfinite(score)))
    assert bool(jnp.all(jnp.isfinite(recon_err)))
    assert bool(jnp.allclose(score, ref_score, atol=2e-2, rtol=2e-2))
    assert bool(jnp.allclose(recon_err, ref_recon, atol=2e-2, rtol=2e-2))
    print("KERNEL_OK")
</pallas_src>

<mosaic_0001>
module attributes {stable_mosaic.version = 11 : i64} {
  func.func @simple_kernel(%arg0: i32, %arg1: memref<4x128x128xbf16, #tpu.memory_space<vmem>>, %arg2: memref<2x128x128xbf16, #tpu.memory_space<vmem>>, %arg3: memref<128x128xf32, #tpu.memory_space<vmem>>, %arg4: memref<1x128xf32, #tpu.memory_space<vmem>>, %arg5: memref<128x128xf32, #tpu.memory_space<vmem>>, %arg6: memref<1x128xf32, #tpu.memory_space<vmem>>, %arg7: memref<1x128xf32, #tpu.memory_space<vmem>>, %arg8: memref<1x128xf32, #tpu.memory_space<vmem>>) attributes {dimension_semantics = [#tpu.dimension_semantics<parallel>], iteration_bounds = array<i64: 1>, scalar_prefetch = 0 : i64, scratch_operands = 0 : i64, tpu.core_type = #tpu.core_type<tc>, window_params = [{transform_indices = @transform_0, window_bounds = array<i64: 4, 128, 128>}, {transform_indices = @transform_1, window_bounds = array<i64: 2, 128, 128>}, {pipeline_mode = #tpu.pipeline_mode<synchronous>, transform_indices = @transform_2, window_bounds = array<i64: 128, 128>}, {pipeline_mode = #tpu.pipeline_mode<synchronous>, transform_indices = @transform_3, window_bounds = array<i64: 1, 128>}, {pipeline_mode = #tpu.pipeline_mode<synchronous>, transform_indices = @transform_4, window_bounds = array<i64: 128, 128>}, {pipeline_mode = #tpu.pipeline_mode<synchronous>, transform_indices = @transform_5, window_bounds = array<i64: 1, 128>}, {transform_indices = @transform_6, window_bounds = array<i64: 1, 128>}, {transform_indices = @transform_7, window_bounds = array<i64: 1, 128>}]} {
    %c0 = arith.constant 0 : index
    %c0_0 = arith.constant 0 : index
    %c0_1 = arith.constant 0 : index
    %0 = vector.load %arg1[%c0, %c0_0, %c0_1] : memref<4x128x128xbf16, #tpu.memory_space<vmem>>, vector<4x128x128xbf16>
    %1 = arith.extf %0 : vector<4x128x128xbf16> to vector<4x128x128xf32>
    %2 = vector.extract_strided_slice %1 {offsets = [0, 0, 0], sizes = [1, 128, 128], strides = [1, 1, 1]} : vector<4x128x128xf32> to vector<1x128x128xf32>
    %3 = vector.shape_cast %2 : vector<1x128x128xf32> to vector<128x128xf32>
    %4 = vector.extract_strided_slice %1 {offsets = [1, 0, 0], sizes = [1, 128, 128], strides = [1, 1, 1]} : vector<4x128x128xf32> to vector<1x128x128xf32>
    %5 = vector.shape_cast %4 : vector<1x128x128xf32> to vector<128x128xf32>
    %6 = vector.extract_strided_slice %1 {offsets = [2, 0, 0], sizes = [1, 128, 128], strides = [1, 1, 1]} : vector<4x128x128xf32> to vector<1x128x128xf32>
    %7 = vector.shape_cast %6 : vector<1x128x128xf32> to vector<128x128xf32>
    %8 = vector.extract_strided_slice %1 {offsets = [3, 0, 0], sizes = [1, 128, 128], strides = [1, 1, 1]} : vector<4x128x128xf32> to vector<1x128x128xf32>
    %9 = vector.shape_cast %8 : vector<1x128x128xf32> to vector<128x128xf32>
    %c0_2 = arith.constant 0 : index
    %c0_3 = arith.constant 0 : index
    %c0_4 = arith.constant 0 : index
    %10 = vector.load %arg2[%c0_2, %c0_3, %c0_4] : memref<2x128x128xbf16, #tpu.memory_space<vmem>>, vector<2x128x128xbf16>
    %11 = arith.extf %10 : vector<2x128x128xbf16> to vector<2x128x128xf32>
    %12 = vector.shape_cast %11 : vector<2x128x128xf32> to vector<256x128xf32>
    %c0_5 = arith.constant 0 : index
    %c0_6 = arith.constant 0 : index
    %13 = vector.load %arg3[%c0_5, %c0_6] : memref<128x128xf32, #tpu.memory_space<vmem>>, vector<128x128xf32>
    %cst = arith.constant dense<0.000000e+00> : vector<256x128xf32>
    %14 = tpu.matmul %12, %13, %cst {dimension_numbers = #tpu.dot_dimension_numbers<[1], [0], [0], [1], [0, 0, 1, 1], [], []>} : vector<256x128xf32>, vector<128x128xf32>, vector<256x128xf32> -> vector<256x128xf32>
    %c0_7 = arith.constant 0 : index
    %c0_8 = arith.constant 0 : index
    %15 = vector.load %arg4[%c0_7, %c0_8] : memref<1x128xf32, #tpu.memory_space<vmem>>, vector<1x128xf32>
    %16 = vector.broadcast %15 : vector<1x128xf32> to vector<256x128xf32>
    %17 = arith.addf %14, %16 : vector<256x128xf32>
    %18 = math.tanh %17 : vector<256x128xf32>
    %c0_9 = arith.constant 0 : index
    %c0_10 = arith.constant 0 : index
    %19 = vector.load %arg5[%c0_9, %c0_10] : memref<128x128xf32, #tpu.memory_space<vmem>>, vector<128x128xf32>
    %cst_11 = arith.constant dense<0.000000e+00> : vector<256x128xf32>
    %20 = tpu.matmul %18, %19, %cst_11 {dimension_numbers = #tpu.dot_dimension_numbers<[1], [0], [0], [1], [0, 0, 1, 1], [], []>} : vector<256x128xf32>, vector<128x128xf32>, vector<256x128xf32> -> vector<256x128xf32>
    %c0_12 = arith.constant 0 : index
    %c0_13 = arith.constant 0 : index
    %21 = vector.load %arg6[%c0_12, %c0_13] : memref<1x128xf32, #tpu.memory_space<vmem>>, vector<1x128xf32>
    %22 = vector.broadcast %21 : vector<1x128xf32> to vector<256x128xf32>
    %23 = arith.addf %20, %22 : vector<256x128xf32>
    %24 = arith.subf %23, %12 : vector<256x128xf32>
    %25 = arith.mulf %24, %24 : vector<256x128xf32>
    %cst_14 = arith.constant dense<0.000000e+00> : vector<256xf32>
    %26 = vector.multi_reduction <add>, %25, %cst_14 [1] : vector<256x128xf32> to vector<256xf32>
    %cst_15 = arith.constant 6.250000e-02 : f32
    %27 = vector.broadcast %cst_15 : f32 to vector<256xf32>
    %28 = arith.mulf %26, %27 : vector<256xf32>
    %29 = vector.extract_strided_slice %18 {offsets = [0, 0], sizes = [128, 128], strides = [1, 1]} : vector<256x128xf32> to vector<128x128xf32>
    %30 = vector.extract_strided_slice %18 {offsets = [128, 0], sizes = [128, 128], strides = [1, 1]} : vector<256x128xf32> to vector<128x128xf32>
    %31 = vector.extract_strided_slice %28 {offsets = [0], sizes = [128], strides = [1]} : vector<256xf32> to vector<128xf32>
    %32 = vector.extract_strided_slice %28 {offsets = [128], sizes = [128], strides = [1]} : vector<256xf32> to vector<128xf32>
    %33 = arith.mulf %3, %7 : vector<128x128xf32>
    %34 = arith.mulf %33, %5 : vector<128x128xf32>
    %cst_16 = arith.constant dense<0.000000e+00> : vector<128xf32>
    %35 = vector.multi_reduction <add>, %34, %cst_16 [1] : vector<128x128xf32> to vector<128xf32>
    %36 = arith.mulf %30, %9 : vector<128x128xf32>
    %37 = arith.mulf %36, %29 : vector<128x128xf32>
    %cst_17 = arith.constant dense<0.000000e+00> : vector<128xf32>
    %38 = vector.multi_reduction <add>, %37, %cst_17 [1] : vector<128x128xf32> to vector<128xf32>
    %39 = arith.addf %35, %38 : vector<128xf32>
    %cst_18 = arith.constant 5.000000e-01 : f32
    %40 = vector.broadcast %cst_18 : f32 to vector<128xf32>
    %41 = arith.mulf %40, %39 : vector<128xf32>
    %cst_19 = arith.constant -2.000000e+01 : f32
    %cst_20 = arith.constant 2.000000e+01 : f32
    %42 = vector.broadcast %cst_19 : f32 to vector<128xf32>
    %43 = arith.maximumf %42, %41 : vector<128xf32>
    %44 = vector.broadcast %cst_20 : f32 to vector<128xf32>
    %45 = arith.minimumf %44, %43 : vector<128xf32>
    %46 = vector.shape_cast %45 : vector<128xf32> to vector<1x128xf32>
    %c0_21 = arith.constant 0 : index
    %c0_22 = arith.constant 0 : index
    %47 = vector.load %arg7[%c0_21, %c0_22] : memref<1x128xf32, #tpu.memory_space<vmem>>, vector<1x128xf32>
    tpu.vector_store %arg7[%c0_21, %c0_22], %46 {strides = array<i32>} : memref<1x128xf32, #tpu.memory_space<vmem>>, vector<1x128xf32>,
    %48 = arith.addf %31, %32 : vector<128xf32>
    %49 = vector.shape_cast %48 : vector<128xf32> to vector<1x128xf32>
    %c0_23 = arith.constant 0 : index
    %c0_24 = arith.constant 0 : index
    %50 = vector.load %arg8[%c0_23, %c0_24] : memref<1x128xf32, #tpu.memory_space<vmem>>, vector<1x128xf32>
    tpu.vector_store %arg8[%c0_23, %c0_24], %49 {strides = array<i32>} : memref<1x128xf32, #tpu.memory_space<vmem>>, vector<1x128xf32>,
    return
  }
  func.func @transform_0(%arg0: i32) -> (i32, i32, i32) {
    %c0_i32 = arith.constant 0 : i32
    %c0_i32_0 = arith.constant 0 : i32
    %c0_i32_1 = arith.constant 0 : i32
    return %c0_i32, %arg0, %c0_i32_0 : i32, i32, i32
  }
  func.func @transform_1(%arg0: i32) -> (i32, i32, i32) {
    %c0_i32 = arith.constant 0 : i32
    %c0_i32_0 = arith.constant 0 : i32
    %c0_i32_1 = arith.constant 0 : i32
    return %c0_i32, %arg0, %c0_i32_0 : i32, i32, i32
  }
  func.func @transform_2(%arg0: i32) -> (i32, i32) {
    %c0_i32 = arith.constant 0 : i32
    %c0_i32_0 = arith.constant 0 : i32
    %c0_i32_1 = arith.constant 0 : i32
    return %c0_i32, %c0_i32_0 : i32, i32
  }
  func.func @transform_3(%arg0: i32) -> (i32, i32) {
    %c0_i32 = arith.constant 0 : i32
    %c0_i32_0 = arith.constant 0 : i32
    %c0_i32_1 = arith.constant 0 : i32
    return %c0_i32, %c0_i32_0 : i32, i32
  }
  func.func @transform_4(%arg0: i32) -> (i32, i32) {
    %c0_i32 = arith.constant 0 : i32
    %c0_i32_0 = arith.constant 0 : i32
    %c0_i32_1 = arith.constant 0 : i32
    return %c0_i32, %c0_i32_0 : i32, i32
  }
  func.func @transform_5(%arg0: i32) -> (i32, i32) {
    %c0_i32 = arith.constant 0 : i32
    %c0_i32_0 = arith.constant 0 : i32
    %c0_i32_1 = arith.constant 0 : i32
    return %c0_i32, %c0_i32_0 : i32, i32
  }
  func.func @transform_6(%arg0: i32) -> (i32, i32) {
    %c0_i32 = arith.constant 0 : i32
    %c0_i32_0 = arith.constant 0 : i32
    return %c0_i32, %arg0 : i32, i32
  }
  func.func @transform_7(%arg0: i32) -> (i32, i32) {
    %c0_i32 = arith.constant 0 : i32
    %c0_i32_0 = arith.constant 0 : i32
    return %c0_i32, %arg0 : i32, i32
  }
}

</mosaic_0001>

<bundles_post_ra>
// kernel: simple_forward.1
= control target key start
LH: loop header
LB: loop body
LE: loop exit
PB: predicated region body
PF: predicated region fallthrough
CT: control target
= control target key end

     0   :  { %vm1124_vm0 = vcmask 130112   ;;  %vm1131_vm1 = vcmask 195712   ;;  %vm1138_vm2 = vcmask 261312   ;;  %vm1145_vm3 = vcmask 326912   ;;  %s2775_s2 = inlined_call_operand.vmem [shape: f32[128,128], index: 2, kind: input, shape index: {}]   ;;  %s2776_s1 = inlined_call_operand.vmem [shape: bf16[2,128,128], index: 1, kind: input, shape index: {}]   ;;  %s2777_s4 = inlined_call_operand.vmem [shape: f32[128,128], index: 4, kind: input, shape index: {}]   ;;  %s2778_s0 = inlined_call_operand.vmem [shape: bf16[4,128,128], index: 0, kind: input, shape index: {}]   ;;  %s2779_s3 = inlined_call_operand.vmem [shape: f32[1,128], index: 3, kind: input, shape index: {}]   ;;  %s2780_s5 = inlined_call_operand.vmem [shape: f32[1,128], index: 5, kind: input, shape index: {}]   ;;  %s2781_s6 = inlined_call_operand.vmem [shape: f32[1,128], index: 6, kind: output, shape index: {0}]   ;;  %s2782_s7 = inlined_call_operand.vmem [shape: f32[1,128], index: 7, kind: output, shape index: {1}]  }
   0x1   :  { %v217_v0 = vld [vmem:[%s2775_s2] sm:$0xff]  ;;  %v218_v1 = vld [vmem:[%s2775_s2 + $0x8] sm:$0xff]  ;;  %v219_v2 = vld [vmem:[%s2775_s2 + $0x10] sm:$0xff]  ;;  %vm1152_vm4 = vcmask 392512   ;;  %vm1159_vm5 = vcmask 458112   ;;  %vm1166_vm6 = vcmask 523712  }
   0x2   :  { %v1859_v3 = vpack.c.bf16 %v218_v1, %v217_v0  ;;  %v220_v4 = vld [vmem:[%s2775_s2 + $0x18] sm:$0xff]  ;;  %v221_v6 = vld [vmem:[%s2775_s2 + $0x20] sm:$0xff]  ;;  %v222_v7 = vld [vmem:[%s2775_s2 + $0x28] sm:$0xff]  ;;  %vm1173_vm7 = vcmask 589312   ;;  %vm1180_vm8 = vcmask 654912   ;;  %vm1187_vm9 = vcmask 720512  }
   0x3   :  { %v1863_v5 = vpack.c.bf16 %v220_v4, %v219_v2  ;;  %v1867_v8 = vpack.c.bf16 %v222_v7, %v221_v6  ;;  %v2048_v9 = vld [vmem:[%s2776_s1] sm:$0xff]   ;;  %v223_v10 = vld [vmem:[%s2775_s2 + $0x30] sm:$0xff]  ;;  %v224_v11 = vld [vmem:[%s2775_s2 + $0x38] sm:$0xff]  ;;  %vm1194_vm10 = vcmask 786112   ;;  %vm1201_vm11 = vcmask 851712  }
   0x4   :  { %1860 = vmatprep.subr.bf16.mxu0 %v1859_v3  ;;  %v1495_v12 = vunpack.c.l.bf16 %v2048_v9  ;;  %v1871_v13 = vpack.c.bf16 %v224_v11, %v223_v10  ;;  %v225_v14 = vld [vmem:[%s2775_s2 + $0x40] sm:$0xff]  ;;  %v226_v15 = vld [vmem:[%s2775_s2 + $0x48] sm:$0xff]  ;;  %v499_v18 = vld [vmem:[%s2777_s4 + $0x10] sm:$0xff]  ;;  %v1496_v39 = vunpack.c.h.bf16 %v2048_v9  ;;  %vm1208_vm12 = vcmask 917312  }
   0x5   :  { %1862 = vmatpush3.bf16.msra.mxu0 %v1859_v3  ;;  %v497_v16 = vld [vmem:[%s2777_s4] sm:$0xff]  ;;  %v498_v17 = vld [vmem:[%s2777_s4 + $0x8] sm:$0xff]  ;;  %v500_v19 = vld [vmem:[%s2777_s4 + $0x18] sm:$0xff]  ;;  %v1875_v20 = vpack.c.bf16 %v226_v15, %v225_v14  ;;  %vm1215_vm13 = vcmask 982912   ;;  %vm1222_vm14 = vcmask 1048512  }
   0x6   :  { %1864 = vmatprep.subr.bf16.mxu0 %v1863_v5  ;;  %1731 = vmatprep.mubr.f32.mxu0 %v1495_v12  ;;  %v227_v21 = vld [vmem:[%s2775_s2 + $0x50] sm:$0xff]  ;;  %v228_v22 = vld [vmem:[%s2775_s2 + $0x58] sm:$0xff]  ;;  %v1891_v23 = vpack.c.bf16 %v498_v17, %v497_v16  ;;  %v1895_v24 = vpack.c.bf16 %v500_v19, %v499_v18  ;;  %v501_v25 = vld [vmem:[%s2777_s4 + $0x20] sm:$0xff] }
   0x7   :  { %v502_v26 = vld [vmem:[%s2777_s4 + $0x28] sm:$0xff]  ;;  %v1879_v27 = vpack.c.bf16 %v228_v22, %v227_v21  ;;  %v229_v28 = vld [vmem:[%s2775_s2 + $0x60] sm:$0xff]  ;;  %v503_v31 = vld [vmem:[%s2777_s4 + $0x30] sm:$0xff] }
   0x8   :  { %1892 = vmatprep.subr.bf16.mxu1 %v1891_v23  ;;  %v230_v29 = vld [vmem:[%s2775_s2 + $0x68] sm:$0xff]  ;;  %v1899_v30 = vpack.c.bf16 %v502_v26, %v501_v25  ;;  %v504_v32 = vld [vmem:[%s2777_s4 + $0x38] sm:$0xff]  ;;  %v231_v34 = vld [vmem:[%s2775_s2 + $0x70] sm:$0xff] }
   0x9   :  { %1866 = vmatpush3.bf16.msra.mxu0 %v1863_v5  ;;  %1894 = vmatpush3.bf16.msra.mxu1 %v1891_v23  ;;  %v1883_v33 = vpack.c.bf16 %v230_v29, %v229_v28  ;;  %v232_v35 = vld [vmem:[%s2775_s2 + $0x78] sm:$0xff]  ;;  %v1903_v36 = vpack.c.bf16 %v504_v32, %v503_v31  ;;  %v2110_v38 = vld [vmem:[%s2776_s1 + $0x8] sm:$0xff]   ;;  %v2117_v41 = vld [vmem:[%s2776_s1 + $0x10] sm:$0xff]  }
   0xa   :  { %1868 = vmatprep.subr.bf16.mxu0 %v1867_v8  ;;  %1896 = vmatprep.subr.bf16.mxu1 %v1895_v24  ;;  %v1887_v37 = vpack.c.bf16 %v232_v35, %v231_v34  ;;  %v1499_v40 = vunpack.c.l.bf16 %v2110_v38  ;;  %v1500_v42 = vunpack.c.h.bf16 %v2110_v38  ;;  %v1503_v43 = vunpack.c.l.bf16 %v2117_v41  ;;  %v2128_v44 = vld [vmem:[%s2776_s1 + $0x18] sm:$0xff]   ;;  %v2139_v47 = vld [vmem:[%s2776_s1 + $0x20] sm:$0xff]   ;;  %v2150_v50 = vld [vmem:[%s2776_s1 + $0x28] sm:$0xff]  }
   0xb   :  { %v1504_v45 = vunpack.c.h.bf16 %v2117_v41  ;;  %v1507_v46 = vunpack.c.l.bf16 %v2128_v44  ;;  %v1508_v48 = vunpack.c.h.bf16 %v2128_v44  ;;  %v1511_v49 = vunpack.c.l.bf16 %v2139_v47  ;;  %v2161_v53 = vld [vmem:[%s2776_s1 + $0x30] sm:$0xff]   ;;  %v2172_v56 = vld [vmem:[%s2776_s1 + $0x38] sm:$0xff]   ;;  %v2183_v59 = vld [vmem:[%s2776_s1 + $0x40] sm:$0xff]  }
   0xc   :  { %v1512_v51 = vunpack.c.h.bf16 %v2139_v47  ;;  %v1515_v52 = vunpack.c.l.bf16 %v2150_v50  ;;  %v2803_v54 = vunpack.c.h.bf16 %v2150_v50  ;;  %v2802_v55 = vunpack.c.l.bf16 %v2161_v53  ;;  %v2194_v62 = vld [vmem:[%s2776_s1 + $0x48] sm:$0xff]   ;;  %v2205_v1 = vld [vmem:[%s2776_s1 + $0x50] sm:$0xff]   ;;  %v2216_v4 = vld [vmem:[%s2776_s1 + $0x58] sm:$0xff]  }
   0xd   :  { %1870 = vmatpush3.bf16.msra.mxu0 %v1867_v8  ;;  %1898 = vmatpush3.bf16.msra.mxu1 %v1895_v24  ;;  %v2801_v57 = vunpack.c.h.bf16 %v2161_v53  ;;  %v2800_v58 = vunpack.c.l.bf16 %v2172_v56  ;;  %v2799_v60 = vunpack.c.h.bf16 %v2172_v56  ;;  %v2798_v61 = vunpack.c.l.bf16 %v2183_v59  ;;  %v2227_v7 = vld [vmem:[%s2776_s1 + $0x60] sm:$0xff]   ;;  %v2238_v11 = vld [vmem:[%s2776_s1 + $0x68] sm:$0xff]   ;;  %v2249_v15 = vld [vmem:[%s2776_s1 + $0x70] sm:$0xff]  }
   0xe   :  { %1872 = vmatprep.subr.bf16.mxu0 %v1871_v13  ;;  %1900 = vmatprep.subr.bf16.mxu1 %v1899_v30  ;;  %v2797_v63 = vunpack.c.h.bf16 %v2183_v59  ;;  %v2796_v0 = vunpack.c.l.bf16 %v2194_v62  ;;  %v2795_v2 = vunpack.c.h.bf16 %v2194_v62  ;;  %v2794_v3 = vunpack.c.l.bf16 %v2205_v1  ;;  %v2260_v18 = vld [vmem:[%s2776_s1 + $0x78] sm:$0xff]   ;;  %v505_v22 = vld [vmem:[%s2777_s4 + $0x40] sm:$0xff]  ;;  %v506_v23 = vld [vmem:[%s2777_s4 + $0x48] sm:$0xff] }
   0xf   :  { %v2793_v5 = vunpack.c.h.bf16 %v2205_v1  ;;  %v2792_v6 = vunpack.c.l.bf16 %v2216_v4  ;;  %v2791_v8 = vunpack.c.h.bf16 %v2216_v4  ;;  %v2790_v10 = vunpack.c.l.bf16 %v2227_v7  ;;  %v507_v25 = vld [vmem:[%s2777_s4 + $0x50] sm:$0xff]  ;;  %v508_v26 = vld [vmem:[%s2777_s4 + $0x58] sm:$0xff]  ;;  %v509_v28 = vld [vmem:[%s2777_s4 + $0x60] sm:$0xff] }
  0x10   :  { %v2788_v14 = vunpack.c.l.bf16 %v2238_v11  ;;  %v2787_v16 = vunpack.c.h.bf16 %v2238_v11  ;;  %v2786_v17 = vunpack.c.l.bf16 %v2249_v15  ;;  %v2785_v19 = vunpack.c.h.bf16 %v2249_v15  ;;  %v510_v29 = vld [vmem:[%s2777_s4 + $0x68] sm:$0xff]  ;;  %v511_v31 = vld [vmem:[%s2777_s4 + $0x70] sm:$0xff]  ;;  %v512_v32 = vld [vmem:[%s2777_s4 + $0x78] sm:$0xff] }
  0x11   :  { %1874 = vmatpush3.bf16.msra.mxu0 %v1871_v13  ;;  %1902 = vmatpush3.bf16.msra.mxu1 %v1899_v30  ;;  %v2789_v13 = vunpack.c.h.bf16 %v2227_v7  ;;  %v2783_v21 = vunpack.c.h.bf16 %v2260_v18  ;;  %v1907_v24 = vpack.c.bf16 %v506_v23, %v505_v22  ;;  %v1915_v30 = vpack.c.bf16 %v510_v29, %v509_v28  ;;  %v1366_v34 = vld [vmem:[%s2778_s0] sm:$0xff]   ;;  %v1557_v29 = vld [vmem:[%s2778_s0 + $0x8] sm:$0xff]  }
  0x12   :  { %1876 = vmatprep.subr.bf16.mxu0 %v1875_v20  ;;  %1904 = vmatprep.subr.bf16.mxu1 %v1903_v36  ;;  %v1572_v35 = vld [vmem:[%s2778_s0 + $0x80] sm:$0xff]   ;;  %v1367_v23 = vunpack.c.l.bf16 %v1366_v34 }
  0x13   :  { %v1564_v22 = vld [vmem:[%s2778_s0 + $0x40] sm:$0xff]  }
  0x15   :  { %1878 = vmatpush3.bf16.msra.mxu0 %v1875_v20  ;;  %1906 = vmatpush3.bf16.msra.mxu1 %v1903_v36  ;;  %v2784_v20 = vunpack.c.l.bf16 %v2260_v18  ;;  %v1368_v36 = vunpack.c.h.bf16 %v1366_v34  ;;  %v1565_v34 = vld [vmem:[%s2778_s0 + $0x48] sm:$0xff]  }
  0x16   :  { %1880 = vmatprep.subr.bf16.mxu0 %v1879_v27  ;;  %1908 = vmatprep.subr.bf16.mxu1 %v1907_v24 }
  0x19   :  { %1882 = vmatpush3.bf16.msra.mxu0 %v1879_v27  ;;  %1910 = vmatpush3.bf16.msra.mxu1 %v1907_v24  ;;  %v1911_v27 = vpack.c.bf16 %v508_v26, %v507_v25  ;;  %v1431_v24 = vunpack.c.l.bf16 %v1572_v35  ;;  %v1400_v25 = vunpack.c.h.bf16 %v1564_v22 }
  0x1a   :  { %1884 = vmatprep.subr.bf16.mxu0 %v1883_v33 }
  0x1b   :  { %1912 = vmatprep.subr.bf16.mxu1 %v1911_v27  ;;  %v905_v28 = vmul.f32 %v1431_v24, %v1367_v23  ;;  %v1403_v23 = vunpack.c.l.bf16 %v1565_v34 }
  0x1d   :  { %1886 = vmatpush3.bf16.msra.mxu0 %v1883_v33  ;;  %1914 = vmatpush3.bf16.msra.mxu1 %v1911_v27  ;;  %v1919_v33 = vpack.c.bf16 %v512_v32, %v511_v31  ;;  %v1399_v27 = vunpack.c.l.bf16 %v1564_v22  ;;  %v1372_v32 = vunpack.c.h.bf16 %v1557_v29 }
  0x1e   :  { %1888 = vmatprep.subr.bf16.mxu0 %v1887_v37  ;;  %1916 = vmatprep.subr.bf16.mxu1 %v1915_v30 }
  0x21   :  { %1890 = vmatpush3.bf16.msra.mxu0 %v1887_v37  ;;  %1918 = vmatpush3.bf16.msra.mxu1 %v1915_v30  ;;  %v1432_v37 = vunpack.c.h.bf16 %v1572_v35  ;;  %v1573_v30 = vld [vmem:[%s2778_s0 + $0x88] sm:$0xff]   ;;  %v1371_v35 = vunpack.c.l.bf16 %v1557_v29  ;;  %v1566_v29 = vld [vmem:[%s2778_s0 + $0x50] sm:$0xff]  }
  0x22   :  { %1920 = vmatprep.subr.bf16.mxu1 %v1919_v33 }
  0x23   :  { %v906_v26 = vmul.f32 %v1432_v37, %v1368_v36  ;;  %v1435_v36 = vunpack.c.l.bf16 %v1573_v30  ;;  %v1404_v37 = vunpack.c.h.bf16 %v1565_v34 }
  0x24   :  { %1732 = vmatmul.mubr.f32.vlgmr.msra.gmra.mrb[0].mxu0 %v1496_v39 }
  0x25   :  { %1734 = vmatprep.mubr.f32.mxu0 %v1499_v40  ;;  %1922 = vmatpush3.bf16.msra.mxu1 %v1919_v33  ;;  %v922_v31 = vmul.f32 %v1400_v25, %v906_v26  ;;  %v1436_v33 = vunpack.c.h.bf16 %v1573_v30  ;;  %v907_v24 = vmul.f32 %v1435_v36, %v1371_v35  ;;  %v1574_v25 = vld [vmem:[%s2778_s0 + $0x90] sm:$0xff]   ;;  %v1559_v35 = vld [vmem:[%s2778_s0 + $0x18] sm:$0xff]  }
  0x26   :  { %v1575_v36 = vld [vmem:[%s2778_s0 + $0x98] sm:$0xff]  }
  0x27   :  { %939 = vadd.xlane.f32.xlu0 %v922_v31  ;;  %v908_v22 = vmul.f32 %v1436_v33, %v1372_v32  ;;  %v1408_v31 = vunpack.c.h.bf16 %v1566_v29  ;;  %v1407_v33 = vunpack.c.l.bf16 %v1566_v29 }
  0x28   :  { %1735 = vmatmul.mubr.f32.gmra.mrb[2].mxu0 %v1500_v42 }
  0x29   :  { %1737 = vmatprep.mubr.f32.mxu0 %v1503_v43  ;;  %v924_v26 = vmul.f32 %v1404_v37, %v908_v22  ;;  %v1380_v22 = vunpack.c.h.bf16 %v1559_v35 }
  0x2b   :  { %943 = vadd.xlane.f32.xlu0 %v924_v26 }
  0x2c   :  { %1738 = vmatmul.mubr.f32.gmra.mrb[4].mxu0 %v1504_v45 }
  0x2d   :  { %1740 = vmatprep.mubr.f32.mxu0 %v1507_v46 }
  0x30   :  { %1741 = vmatmul.mubr.f32.gmra.mrb[6].mxu0 %v1508_v48 }
  0x31   :  { %1743 = vmatprep.mubr.f32.mxu0 %v1511_v49 }
  0x34   :  { %1744 = vmatmul.mubr.f32.gmra.mrb[8].mxu0 %v1512_v51 }
  0x35   :  { %1746 = vmatprep.mubr.f32.mxu0 %v1515_v52 }
  0x38   :  { %1747 = vmatmul.mubr.f32.gmra.mrb[10].mxu0 %v2803_v54 }
  0x39   :  { %1749 = vmatprep.mubr.f32.mxu0 %v2802_v55 }
  0x3c   :  { %1750 = vmatmul.mubr.f32.gmra.mrb[12].mxu0 %v2801_v57 }
  0x3d   :  { %1752 = vmatprep.mubr.f32.mxu0 %v2800_v58 }
  0x40   :  { %1753 = vmatmul.mubr.f32.gmra.mrb[14].mxu0 %v2799_v60 }
  0x41   :  { %1755 = vmatprep.mubr.f32.mxu0 %v2798_v61 }
  0x44   :  { %1756 = vmatmul.mubr.f32.gmra.mrb[16].mxu0 %v2797_v63 }
  0x45   :  { %1758 = vmatprep.mubr.f32.mxu0 %v2796_v0 }
  0x48   :  { %1759 = vmatmul.mubr.f32.gmra.mrb[18].mxu0 %v2795_v2 }
  0x49   :  { %1761 = vmatprep.mubr.f32.mxu0 %v2794_v3 }
  0x4c   :  { %1762 = vmatmul.mubr.f32.gmra.mrb[20].mxu0 %v2793_v5 }
  0x4d   :  { %1764 = vmatprep.mubr.f32.mxu0 %v2792_v6 }
  0x50   :  { %1765 = vmatmul.mubr.f32.gmra.mrb[22].mxu0 %v2791_v8 }
  0x51   :  { %1767 = vmatprep.mubr.f32.mxu0 %v2790_v10 }
  0x54   :  { %1768 = vmatmul.mubr.f32.gmra.mrb[24].mxu0 %v2789_v13 }
  0x55   :  { %1770 = vmatprep.mubr.f32.mxu0 %v2788_v14 }
  0x58   :  { %1771 = vmatmul.mubr.f32.gmra.mrb[26].mxu0 %v2787_v16 }
  0x59   :  { %1773 = vmatprep.mubr.f32.mxu0 %v2786_v17 }
  0x5c   :  { %1774 = vmatmul.mubr.f32.gmra.mrb[28].mxu0 %v2785_v19  ;;  %v923_v19 = vmul.f32 %v1403_v23, %v907_v24  ;;  %v1444_v23 = vunpack.c.h.bf16 %v1575_v36 }
  0x5d   :  { %1776 = vmatprep.mubr.f32.mxu0 %v2784_v20  ;;  %v1558_v20 = vld [vmem:[%s2778_s0 + $0x10] sm:$0xff]  }
  0x5e   :  { %v1375_v30 = vunpack.c.l.bf16 %v1558_v20 }
  0x60   :  { %1777 = vmatmul.mubr.f32.gmra.mrb[30].mxu0 %v2783_v21  ;;  %v921_v21 = vmul.f32 %v1399_v27, %v905_v28  ;;  %v1376_v27 = vunpack.c.h.bf16 %v1558_v20  ;;  %v1440_v28 = vunpack.c.h.bf16 %v1574_v25  ;;  %v1567_v20 = vld [vmem:[%s2778_s0 + $0x58] sm:$0xff]  }
  0x61   :  { %v1412_v26 = vunpack.c.h.bf16 %v1567_v20 }
  0x62   :  { %937 = vadd.xlane.f32.xlu1 %v921_v21  ;;  %v1439_v21 = vunpack.c.l.bf16 %v1574_v25  ;;  %v910_v32 = vmul.f32 %v1440_v28, %v1376_v27  ;;  %v1379_v25 = vunpack.c.l.bf16 %v1559_v35  ;;  %v912_v27 = vmul.f32 %v1444_v23, %v1380_v22  ;;  %v1568_v35 = vld [vmem:[%s2778_s0 + $0x60] sm:$0xff]  }
  0x63   :  { %v1411_v28 = vunpack.c.l.bf16 %v1567_v20  ;;  %v1416_v22 = vunpack.c.h.bf16 %v1568_v35 }
  0x64   :  { %v909_v34 = vmul.f32 %v1439_v21, %v1375_v30  ;;  %v926_v37 = vmul.f32 %v1408_v31, %v910_v32  ;;  %v1560_v30 = vld [vmem:[%s2778_s0 + $0x20] sm:$0xff]   ;;  %v928_v31 = vmul.f32 %v1412_v26, %v912_v27 }
  0x65   :  { %v1576_v21 = vld [vmem:[%s2778_s0 + $0xa0] sm:$0xff]   ;;  %v1384_v32 = vunpack.c.h.bf16 %v1560_v30 }
  0x66   :  { %941 = vadd.xlane.f32.xlu1 %v923_v19  ;;  %v925_v24 = vmul.f32 %v1407_v33, %v909_v34  ;;  %v1443_v19 = vunpack.c.l.bf16 %v1575_v36  ;;  %947 = vadd.xlane.f32.xlu0 %v926_v37  ;;  %v1448_v33 = vunpack.c.h.bf16 %v1576_v21  ;;  %v1383_v36 = vunpack.c.l.bf16 %v1560_v30  ;;  %v1569_v30 = vld [vmem:[%s2778_s0 + $0x68] sm:$0xff]  }
  0x67   :  { %v1447_v37 = vunpack.c.l.bf16 %v1576_v21 }
  0x68   :  { %v911_v29 = vmul.f32 %v1443_v19, %v1379_v25  ;;  %v914_v23 = vmul.f32 %v1448_v33, %v1384_v32  ;;  %v1561_v25 = vld [vmem:[%s2778_s0 + $0x28] sm:$0xff]   ;;  %v1420_v32 = vunpack.c.h.bf16 %v1569_v30 }
  0x69   :  { %v913_v20 = vmul.f32 %v1447_v37, %v1383_v36  ;;  %v1577_v19 = vld [vmem:[%s2778_s0 + $0xa8] sm:$0xff]   ;;  %v1388_v27 = vunpack.c.h.bf16 %v1561_v25  ;;  %v1387_v21 = vunpack.c.l.bf16 %v1561_v25  ;;  %v1562_v36 = vld [vmem:[%s2778_s0 + $0x30] sm:$0xff]  }
  0x6a   :  { %945 = vadd.xlane.f32.xlu1 %v925_v24  ;;  %v927_v34 = vmul.f32 %v1411_v28, %v911_v29  ;;  %951 = vadd.xlane.f32.xlu0 %v928_v31  ;;  %v1415_v24 = vunpack.c.l.bf16 %v1568_v35  ;;  %v930_v26 = vmul.f32 %v1416_v22, %v914_v23  ;;  %v1452_v28 = vunpack.c.h.bf16 %v1577_v19  ;;  %v1578_v37 = vld [vmem:[%s2778_s0 + $0xb0] sm:$0xff]  }
  0x6b   :  { %v1451_v31 = vunpack.c.l.bf16 %v1577_v19  ;;  %v1392_v23 = vunpack.c.h.bf16 %v1562_v36  ;;  %v1570_v25 = vld [vmem:[%s2778_s0 + $0x70] sm:$0xff]   ;;  %v1391_v19 = vunpack.c.l.bf16 %v1562_v36  ;;  %v1571_v36 = vld [vmem:[%s2778_s0 + $0x78] sm:$0xff]  }
  0x6c   :  { %v929_v29 = vmul.f32 %v1415_v24, %v913_v20  ;;  %v916_v33 = vmul.f32 %v1452_v28, %v1388_v27  ;;  %v1456_v24 = vunpack.c.h.bf16 %v1578_v37  ;;  %v1424_v27 = vunpack.c.h.bf16 %v1570_v25 }
  0x6d   :  { %v915_v35 = vmul.f32 %v1451_v31, %v1387_v21  ;;  %v1563_v21 = vld [vmem:[%s2778_s0 + $0x38] sm:$0xff]  }
  0x6e   :  { %949 = vadd.xlane.f32.xlu1 %v927_v34  ;;  %955 = vadd.xlane.f32.xlu0 %v930_v26  ;;  %v1419_v34 = vunpack.c.l.bf16 %v1569_v30  ;;  %v932_v22 = vmul.f32 %v1420_v32, %v916_v33  ;;  %v1455_v26 = vunpack.c.l.bf16 %v1578_v37  ;;  %v918_v28 = vmul.f32 %v1456_v24, %v1392_v23  ;;  %v1579_v31 = vld [vmem:[%s2778_s0 + $0xb8] sm:$0xff]  }
  0x6f   :  { %v1396_v33 = vunpack.c.h.bf16 %v1563_v21  ;;  %v1395_v37 = vunpack.c.l.bf16 %v1563_v21  ;;  %v1428_v23 = vunpack.c.h.bf16 %v1571_v36 }
  0x70   :  { %v931_v20 = vmul.f32 %v1419_v34, %v915_v35  ;;  %v917_v30 = vmul.f32 %v1455_v26, %v1391_v19  ;;  %v934_v32 = vmul.f32 %v1424_v27, %v918_v28  ;;  %v1460_v34 = vunpack.c.h.bf16 %v1579_v31  ;;  %v2374_v27 = vld [vmem:[%s2779_s3] ss:$0 sm:$0xff] }
  0x72   :  { %953 = vadd.xlane.f32.xlu1 %v929_v29  ;;  %959 = vadd.xlane.f32.xlu0 %v932_v22  ;;  %v1423_v29 = vunpack.c.l.bf16 %v1570_v25  ;;  %v1459_v22 = vunpack.c.l.bf16 %v1579_v31  ;;  %v920_v24 = vmul.f32 %v1460_v34, %v1396_v33 }
  0x74   :  { %v933_v35 = vmul.f32 %v1423_v29, %v917_v30  ;;  %v919_v25 = vmul.f32 %v1459_v22, %v1395_v37  ;;  %v936_v19 = vmul.f32 %v1428_v23, %v920_v24 }
  0x76   :  { %957 = vadd.xlane.f32.xlu1 %v931_v20  ;;  %963 = vadd.xlane.f32.xlu0 %v934_v32  ;;  %v1427_v20 = vunpack.c.l.bf16 %v1571_v36 }
  0x78   :  { %v935_v26 = vmul.f32 %v1427_v20, %v919_v25 }
  0x7a   :  { %961 = vadd.xlane.f32.xlu1 %v933_v35  ;;  %967 = vadd.xlane.f32.xlu0 %v936_v19 }
  0x7e   :  { %965 = vadd.xlane.f32.xlu1 %v935_v26 }
  0xf7   :  { %v1733_v28 = vpop.f32.mrb[0].mxu0 }
  0xf8   :  { %v312_v29 = vadd.f32 %v1733_v28, %v2374_v27  ;;  %v306_v30 = vpop.f32.mrb[1].mxu0 }
  0xf9   :  { %v307_v21 = vadd.f32 %v2374_v27, %v306_v30 }
  0xfb   :  { %1923 = vtanh.f32 %v307_v21  ;;  %v1736_v31 = vpop.f32.mrb[2].mxu0 }
  0xfc   :  { %1925 = vtanh.f32 %v312_v29  ;;  %v322_v32 = vadd.f32 %v1736_v31, %v2374_v27  ;;  %v316_v33 = vpop.f32.mrb[3].mxu0 }
  0xfd   :  { %v317_v34 = vadd.f32 %v2374_v27, %v316_v33 }
  0xff   :  { %1927 = vtanh.f32 %v317_v34  ;;  %v1739_v35 = vpop.f32.mrb[4].mxu0 }
 0x100   :  { %1929 = vtanh.f32 %v322_v32  ;;  %v332_v36 = vadd.f32 %v1739_v35, %v2374_v27  ;;  %v326_v37 = vpop.f32.mrb[5].mxu0 }
 0x101   :  { %v327_v22 = vadd.f32 %v2374_v27, %v326_v37 }
 0x102   :  { %1931 = vtanh.f32 %v332_v36 }
 0x103   :  { %1933 = vtanh.f32 %v327_v22  ;;  %v1742_v23 = vpop.f32.mrb[6].mxu0 }
 0x104   :  { %v342_v24 = vadd.f32 %v1742_v23, %v2374_v27  ;;  %v336_v20 = vpop.f32.mrb[7].mxu0 }
 0x105   :  { %v2383_v25 = vpop.eup %1923  ;;  %v337_v19 = vadd.f32 %v2374_v27, %v336_v20 }
 0x106   :  { %v2386_v26 = vpop.eup %1925  ;;  %1935 = vtanh.f32 %v342_v24  ;;  %1811 = vmatprep.mubr.f32.mxu1 %v2383_v25 }
 0x107   :  { %1937 = vtanh.f32 %v337_v19  ;;  %v1745_v28 = vpop.f32.mrb[8].mxu0  ;;  %1812 = vmatmul.mubr.f32.vlgmr.msra.gmra.mrb[0].mxu1 %v2386_v26 }
 0x108   :  { %v352_v29 = vadd.f32 %v1745_v28, %v2374_v27  ;;  %v346_v30 = vpop.f32.mrb[9].mxu0 }
 0x109   :  { %v2391_v21 = vpop.eup %1927  ;;  %v347_v31 = vadd.f32 %v2374_v27, %v346_v30 }
 0x10a   :  { %v2394_v32 = vpop.eup %1929  ;;  %1939 = vtanh.f32 %v352_v29  ;;  %1814 = vmatprep.mubr.f32.mxu1 %v2391_v21 }
 0x10b   :  { %1941 = vtanh.f32 %v347_v31  ;;  %v1748_v33 = vpop.f32.mrb[10].mxu0  ;;  %1815 = vmatmul.mubr.f32.gmra.mrb[2].mxu1 %v2394_v32 }
 0x10c   :  { %v2398_v34 = vpop.eup %1931  ;;  %v362_v35 = vadd.f32 %v1748_v33, %v2374_v27  ;;  %v356_v36 = vpop.f32.mrb[11].mxu0 }
 0x10d   :  { %v2401_v37 = vpop.eup %1933  ;;  %v357_v22 = vadd.f32 %v2374_v27, %v356_v36 }
 0x10e   :  { %1943 = vtanh.f32 %v362_v35  ;;  %1817 = vmatprep.mubr.f32.mxu1 %v2401_v37 }
 0x10f   :  { %1945 = vtanh.f32 %v357_v22  ;;  %v1751_v23 = vpop.f32.mrb[12].mxu0  ;;  %1818 = vmatmul.mubr.f32.gmra.mrb[4].mxu1 %v2398_v34 }
 0x110   :  { %v2406_v24 = vpop.eup %1935  ;;  %v372_v20 = vadd.f32 %v1751_v23, %v2374_v27  ;;  %v366_v19 = vpop.f32.mrb[13].mxu0 }
 0x111   :  { %v2409_v28 = vpop.eup %1937  ;;  %v367_v29 = vadd.f32 %v2374_v27, %v366_v19 }
 0x112   :  { %1947 = vtanh.f32 %v372_v20  ;;  %1820 = vmatprep.mubr.f32.mxu1 %v2409_v28 }
 0x113   :  { %1949 = vtanh.f32 %v367_v29  ;;  %v1754_v30 = vpop.f32.mrb[14].mxu0  ;;  %1821 = vmatmul.mubr.f32.gmra.mrb[6].mxu1 %v2406_v24 }
 0x114   :  { %v2414_v31 = vpop.eup %1939  ;;  %v382_v33 = vadd.f32 %v1754_v30, %v2374_v27  ;;  %v376_v35 = vpop.f32.mrb[15].mxu0 }
 0x115   :  { %v2417_v36 = vpop.eup %1941  ;;  %v377_v22 = vadd.f32 %v2374_v27, %v376_v35 }
 0x116   :  { %1951 = vtanh.f32 %v382_v33  ;;  %1823 = vmatprep.mubr.f32.mxu1 %v2417_v36 }
 0x117   :  { %1953 = vtanh.f32 %v377_v22  ;;  %v1757_v23 = vpop.f32.mrb[16].mxu0  ;;  %1824 = vmatmul.mubr.f32.gmra.mrb[8].mxu1 %v2414_v31 }
 0x118   :  { %v2422_v20 = vpop.eup %1943  ;;  %v392_v19 = vadd.f32 %v1757_v23, %v2374_v27  ;;  %v386_v29 = vpop.f32.mrb[17].mxu0 }
 0x119   :  { %v2425_v17 = vpop.eup %1945  ;;  %v387_v30 = vadd.f32 %v2374_v27, %v386_v29 }
 0x11a   :  { %1955 = vtanh.f32 %v392_v19  ;;  %1826 = vmatprep.mubr.f32.mxu1 %v2425_v17  ;;  %v1580_v19 = vld [vmem:[%s2778_s0 + $0xc0] sm:$0xff]  }
 0x11b   :  { %1957 = vtanh.f32 %v387_v30  ;;  %v1760_v33 = vpop.f32.mrb[18].mxu0  ;;  %1827 = vmatmul.mubr.f32.gmra.mrb[10].mxu1 %v2422_v20  ;;  %v1463_v8 = vunpack.c.l.bf16 %v1580_v19 }
 0x11c   :  { %v2430_v35 = vpop.eup %1947  ;;  %v402_v22 = vadd.f32 %v1760_v33, %v2374_v27  ;;  %v396_v16 = vpop.f32.mrb[19].mxu0 }
 0x11d   :  { %v2433_v14 = vpop.eup %1949  ;;  %v397_v23 = vadd.f32 %v2374_v27, %v396_v16 }
 0x11e   :  { %1959 = vtanh.f32 %v402_v22  ;;  %1829 = vmatprep.mubr.f32.mxu1 %v2433_v14  ;;  %v1464_v22 = vunpack.c.h.bf16 %v1580_v19 }
 0x11f   :  { %1961 = vtanh.f32 %v397_v23  ;;  %v1763_v29 = vpop.f32.mrb[20].mxu0  ;;  %1830 = vmatmul.mubr.f32.gmra.mrb[12].mxu1 %v2430_v35  ;;  %v1581_v23 = vld [vmem:[%s2778_s0 + $0xc8] sm:$0xff]  }
 0x120   :  { %v2441_v30 = vpop.eup %1951  ;;  %v412_v33 = vadd.f32 %v1763_v29, %v2374_v27  ;;  %v406_v13 = vpop.f32.mrb[21].mxu0  ;;  %v1467_v63 = vunpack.c.l.bf16 %v1581_v23 }
 0x121   :  { %v2444_v10 = vpop.eup %1953  ;;  %v407_v16 = vadd.f32 %v2374_v27, %v406_v13 }
 0x122   :  { %1963 = vtanh.f32 %v412_v33  ;;  %1832 = vmatprep.mubr.f32.mxu1 %v2444_v10  ;;  %v1468_v33 = vunpack.c.h.bf16 %v1581_v23 }
 0x123   :  { %1965 = vtanh.f32 %v407_v16  ;;  %v1766_v6 = vpop.f32.mrb[22].mxu0  ;;  %1833 = vmatmul.mubr.f32.gmra.mrb[14].mxu1 %v2441_v30  ;;  %v1582_v16 = vld [vmem:[%s2778_s0 + $0xd0] sm:$0xff]  }
 0x124   :  { %v1956_v5 = vpop.eup %1955  ;;  %v422_v29 = vadd.f32 %v1766_v6, %v2374_v27  ;;  %v416_v3 = vpop.f32.mrb[23].mxu0 }
 0x125   :  { %v1958_v2 = vpop.eup %1957  ;;  %v417_v13 = vadd.f32 %v2374_v27, %v416_v3  ;;  %v970_v0 = vmul.f32 %v1956_v5, %v1464_v22 }
 0x126   :  { %1967 = vtanh.f32 %v422_v29  ;;  %1835 = vmatprep.mubr.f32.mxu1 %v1958_v2  ;;  %v969_v19 = vmul.f32 %v1958_v2, %v1463_v8  ;;  %v1472_v8 = vunpack.c.h.bf16 %v1582_v16 }
 0x127   :  { %1969 = vtanh.f32 %v417_v13  ;;  %v1769_v61 = vpop.f32.mrb[24].mxu0  ;;  %1836 = vmatmul.mubr.f32.gmra.mrb[16].mxu1 %v1956_v5  ;;  %v986_v60 = vmul.f32 %v2386_v26, %v970_v0  ;;  %v1471_v13 = vunpack.c.l.bf16 %v1582_v16  ;;  %v1583_v0 = vld [vmem:[%s2778_s0 + $0xd8] sm:$0xff]  }
 0x128   :  { %v1960_v6 = vpop.eup %1959  ;;  %v432_v58 = vadd.f32 %v1769_v61, %v2374_v27  ;;  %v426_v57 = vpop.f32.mrb[25].mxu0  ;;  %v985_v3 = vmul.f32 %v2383_v25, %v969_v19  ;;  %v1476_v19 = vunpack.c.h.bf16 %v1583_v0 }
 0x129   :  { %v1962_v22 = vpop.eup %1961  ;;  %v427_v29 = vadd.f32 %v2374_v27, %v426_v57  ;;  %1003 = vadd.xlane.f32.xlu0 %v986_v60  ;;  %v972_v2 = vmul.f32 %v1960_v6, %v1468_v33 }
 0x12a   :  { %1971 = vtanh.f32 %v432_v58  ;;  %1838 = vmatprep.mubr.f32.mxu1 %v1962_v22  ;;  %1001 = vadd.xlane.f32.xlu1 %v985_v3  ;;  %v971_v23 = vmul.f32 %v1962_v22, %v1467_v63  ;;  %v1475_v3 = vunpack.c.l.bf16 %v1583_v0 }
 0x12b   :  { %1973 = vtanh.f32 %v427_v29  ;;  %v1772_v61 = vpop.f32.mrb[26].mxu0  ;;  %1839 = vmatmul.mubr.f32.gmra.mrb[18].mxu1 %v1960_v6  ;;  %v988_v5 = vmul.f32 %v2394_v32, %v972_v2  ;;  %v1584_v32 = vld [vmem:[%s2778_s0 + $0xe0] sm:$0xff]  }
 0x12c   :  { %v1964_v25 = vpop.eup %1963  ;;  %v442_v57 = vadd.f32 %v1772_v61, %v2374_v27  ;;  %v436_v60 = vpop.f32.mrb[27].mxu0  ;;  %v987_v26 = vmul.f32 %v2391_v21, %v971_v23  ;;  %v1480_v61 = vunpack.c.h.bf16 %v1584_v32 }
 0x12d   :  { %v1966_v58 = vpop.eup %1965  ;;  %v437_v33 = vadd.f32 %v2374_v27, %v436_v60  ;;  %v974_v63 = vmul.f32 %v1964_v25, %v1472_v8 }
 0x12e   :  { %1975 = vtanh.f32 %v442_v57  ;;  %1841 = vmatprep.mubr.f32.mxu1 %v1966_v58  ;;  %1005 = vadd.xlane.f32.xlu0 %v987_v26  ;;  %v973_v16 = vmul.f32 %v1966_v58, %v1471_v13 }
 0x12f   :  { %1977 = vtanh.f32 %v437_v33  ;;  %1007 = vadd.xlane.f32.xlu1 %v988_v5  ;;  %v1775_v6 = vpop.f32.mrb[28].mxu0  ;;  %1842 = vmatmul.mubr.f32.gmra.mrb[20].mxu1 %v1964_v25  ;;  %v990_v21 = vmul.f32 %v2398_v34, %v974_v63  ;;  %v1479_v5 = vunpack.c.l.bf16 %v1584_v32  ;;  %v1585_v34 = vld [vmem:[%s2778_s0 + $0xe8] sm:$0xff]  }
 0x130   :  { %v1968_v22 = vpop.eup %1967  ;;  %v452_v29 = vadd.f32 %v1775_v6, %v2374_v27  ;;  %v446_v2 = vpop.f32.mrb[29].mxu0  ;;  %v989_v8 = vmul.f32 %v2401_v37, %v973_v16  ;;  %v1483_v6 = vunpack.c.l.bf16 %v1585_v34 }
 0x131   :  { %v1970_v23 = vpop.eup %1969  ;;  %v447_v13 = vadd.f32 %v2374_v27, %v446_v2  ;;  %v976_v0 = vmul.f32 %v1968_v22, %v1476_v19 }
 0x132   :  { %1979 = vtanh.f32 %v452_v29  ;;  %1844 = vmatprep.mubr.f32.mxu1 %v1970_v23  ;;  %1009 = vadd.xlane.f32.xlu0 %v989_v8  ;;  %v975_v57 = vmul.f32 %v1970_v23, %v1475_v3  ;;  %v1484_v3 = vunpack.c.h.bf16 %v1585_v34 }
 0x133   :  { %1981 = vtanh.f32 %v447_v13  ;;  %1011 = vadd.xlane.f32.xlu1 %v990_v21  ;;  %v1778_v25 = vpop.f32.mrb[30].mxu0  ;;  %1845 = vmatmul.mubr.f32.gmra.mrb[22].mxu1 %v1968_v22  ;;  %v992_v37 = vmul.f32 %v2406_v24, %v976_v0  ;;  %v1586_v24 = vld [vmem:[%s2778_s0 + $0xf0] sm:$0xff]   ;;  %v1587_v13 = vld [vmem:[%s2778_s0 + $0xf8] sm:$0xff]  }
 0x134   :  { %v1972_v60 = vpop.eup %1971  ;;  %v462_v26 = vadd.f32 %v1778_v25, %v2374_v27  ;;  %v456_v58 = vpop.f32.mrb[31].mxu0  ;;  %v991_v33 = vmul.f32 %v2409_v28, %v975_v57  ;;  %v1488_v2 = vunpack.c.h.bf16 %v1586_v24  ;;  %v1487_v23 = vunpack.c.l.bf16 %v1586_v24 }
 0x135   :  { %v1974_v63 = vpop.eup %1973  ;;  %v457_v19 = vadd.f32 %v2374_v27, %v456_v58  ;;  %v978_v16 = vmul.f32 %v1972_v60, %v1480_v61  ;;  %v1491_v25 = vunpack.c.l.bf16 %v1587_v13 }
 0x136   :  { %1983 = vtanh.f32 %v462_v26  ;;  %1847 = vmatprep.mubr.f32.mxu1 %v1974_v63  ;;  %1013 = vadd.xlane.f32.xlu0 %v991_v33  ;;  %v977_v32 = vmul.f32 %v1974_v63, %v1479_v5  ;;  %v1492_v5 = vunpack.c.h.bf16 %v1587_v13 }
 0x137   :  { %1985 = vtanh.f32 %v457_v19  ;;  %1015 = vadd.xlane.f32.xlu1 %v992_v37  ;;  %1848 = vmatmul.mubr.f32.gmra.mrb[24].mxu1 %v1972_v60  ;;  %v994_v21 = vmul.f32 %v2414_v31, %v978_v16  ;;  %v940_v19 = vpop.xlane.xlu0 %939  ;;  %v938_v16 = vpop.xlane.xlu1 %937 }
 0x138   :  { %v1976_v28 = vpop.eup %1975  ;;  %v993_v22 = vmul.f32 %v2417_v36, %v977_v32 }
 0x139   :  { %v1978_v27 = vpop.eup %1977  ;;  %v980_v29 = vmul.f32 %v1976_v28, %v1484_v3 }
 0x13a   :  { %1850 = vmatprep.mubr.f32.mxu1 %v1978_v27  ;;  %1017 = vadd.xlane.f32.xlu0 %v993_v22  ;;  %v979_v8 = vmul.f32 %v1978_v27, %v1483_v6 }
 0x13b   :  { %1019 = vadd.xlane.f32.xlu1 %v994_v21  ;;  %1851 = vmatmul.mubr.f32.gmra.mrb[26].mxu1 %v1976_v28  ;;  %v996_v0 = vmul.f32 %v2422_v20, %v980_v29  ;;  %v944_v3 = vpop.xlane.xlu0 %943  ;;  %v1113_v29 = vlaneseq }
 0x13c   :  { %v1980_v61 = vpop.eup %1979  ;;  %v995_v31 = vmul.f32 %v2425_v17, %v979_v8 }
 0x13d   :  { %v1982_v57 = vpop.eup %1981  ;;  %v982_v36 = vmul.f32 %v1980_v61, %v1488_v2 }
 0x13e   :  { %1853 = vmatprep.mubr.f32.mxu1 %v1982_v57  ;;  %1021 = vadd.xlane.f32.xlu0 %v995_v31  ;;  %v981_v34 = vmul.f32 %v1982_v57, %v1487_v23  ;;  %v2514_v23 = vand.u32 127, %v1113_v29 }
 0x13f   :  { %1023 = vadd.xlane.f32.xlu1 %v996_v0  ;;  %1854 = vmatmul.mubr.f32.gmra.mrb[28].mxu1 %v1980_v61  ;;  %v998_v37 = vmul.f32 %v2430_v35, %v982_v36  ;;  %v942_v35 = vpop.xlane.xlu1 %941  ;;  %v948_v32 = vpop.xlane.xlu0 %947  ;;  %v2516_v0 = vshrl.u32 %v1113_v29, 7 }
 0x140   :  { %v1984_v60 = vpop.eup %1983  ;;  %v997_v26 = vmul.f32 %v2433_v14, %v981_v34  ;;  %v1119_v61 = vadd.s32 4294967288, %v2514_v23  ;;  %v1168_v54 = vadd.s32 4294967232, %v2514_v23 }
 0x141   :  { %v1986_v58 = vpop.eup %1985  ;;  %v984_v33 = vmul.f32 %v1984_v60, %v1492_v5 }
 0x142   :  { %1856 = vmatprep.mubr.f32.mxu1 %v1986_v58  ;;  %1025 = vadd.xlane.f32.xlu0 %v997_v26  ;;  %v983_v20 = vmul.f32 %v1986_v58, %v1491_v25  ;;  %v1126_v25 = vadd.s32 4294967280, %v2514_v23  ;;  %v2525_v26 = vsub.s32 %v2514_v23, %v2516_v0 }
 0x143   :  { %1027 = vadd.xlane.f32.xlu1 %v998_v37  ;;  %1857 = vmatmul.mubr.f32.gmra.mrb[30].mxu1 %v1984_v60  ;;  %v1000_v17 = vmul.f32 %v2441_v30, %v984_v33  ;;  %v946_v6 = vpop.xlane.xlu1 %945  ;;  %v2496_v14 = vpop.xlane.xlu0 %951  ;;  %v2521_v37 = vsub.s32 %v1119_v61, %v2516_v0  ;;  %v1133_v33 = vadd.s32 4294967272, %v2514_v23  ;;  %v1147_v61 = vadd.s32 4294967256, %v2514_v23 }
 0x144   :  { %v999_v63 = vmul.f32 %v2444_v10, %v983_v20  ;;  %v2530_v29 = vsub.s32 %v1126_v25, %v2516_v0 }
 0x146   :  { %1029 = vadd.xlane.f32.xlu0 %v999_v63 }
 0x147   :  { %1031 = vadd.xlane.f32.xlu1 %v1000_v17  ;;  %v950_v24 = vpop.xlane.xlu1 %949  ;;  %v2498_v21 = vpop.xlane.xlu0 %955 }
 0x14b   :  { %v2500_v28 = vpop.xlane.xlu1 %953  ;;  %v2502_v22 = vpop.xlane.xlu0 %959 }
 0x14f   :  { %v2504_v30 = vpop.xlane.xlu1 %957  ;;  %v2506_v10 = vpop.xlane.xlu0 %963 }
 0x153   :  { %v2508_v27 = vpop.xlane.xlu1 %961  ;;  %v2510_v2 = vpop.xlane.xlu0 %967 }
 0x157   :  { %v2512_v8 = vpop.xlane.xlu1 %965 }
 0x1b6   :  { %v1004_v13 = vpop.xlane.xlu0 %1003 }
 0x1b7   :  { %v1034_v31 = vadd.f32 %v1004_v13, %v940_v19  ;;  %v1002_v57 = vpop.xlane.xlu1 %1001 }
 0x1b8   :  { %v1033_v36 = vadd.f32 %v1002_v57, %v938_v16  ;;  %v1140_v16 = vadd.s32 4294967264, %v2514_v23 }
 0x1b9   :  { %v1050_v5 = vmul.f32 0.5, %v1034_v31 }
 0x1ba   :  { %v1049_v34 = vmul.f32 0.5, %v1033_v36  ;;  %v2536_v36 = vsub.s32 %v1133_v33, %v2516_v0  ;;  %v2539_v25 = vsub.s32 %v1140_v16, %v2516_v0  ;;  %v1154_v33 = vadd.s32 4294967248, %v2514_v23 }
 0x1bb   :  { %v1350_v60 = vclamps-f32 %v1050_v5, 20.0  ;;  %v1006_v58 = vpop.xlane.xlu0 %1005 }
 0x1bc   :  { %v1349_v20 = vclamps-f32 %v1049_v34, 20.0  ;;  %v1035_v17 = vadd.f32 %v1006_v58, %v942_v35  ;;  %v1008_v63 = vpop.xlane.xlu1 %1007 }
 0x1bd   :  { %v1036_v19 = vadd.f32 %v1008_v63, %v944_v3  ;;  %v1123_v31 = vrot.slane %v1350_v60, %v2521_v37 }
 0x1be   :  { %v1051_v13 = vmul.f32 0.5, %v1035_v17  ;;  %v1118_v57 = vrot.slane %v1349_v20, %v2525_v26  ;;  %v2543_v20 = vsub.s32 %v1147_v61, %v2516_v0 }
 0x1bf   :  { %v1052_v5 = vmul.f32 0.5, %v1036_v19  ;;  %v1010_v34 = vpop.xlane.xlu0 %1009 }
 0x1c0   :  { %v1351_v35 = vclamps-f32 %v1051_v13, 20.0  ;;  %v1037_v3 = vadd.f32 %v1010_v34, %v946_v6  ;;  %v1012_v58 = vpop.xlane.xlu1 %1011  ;;  %v1125_v19 = vsel %vm1124_vm0, %v1123_v31, %v1118_v57  ;;  %v2554_v57 = vsub.s32 %v1154_v33, %v2516_v0 }
 0x1c1   :  { %v1352_v63 = vclamps-f32 %v1052_v5, 20.0  ;;  %v1038_v17 = vadd.f32 %v1012_v58, %v948_v32  ;;  %v1161_v5 = vadd.s32 4294967240, %v2514_v23 }
 0x1c2   :  { %v1130_v55 = vrot.slane %v1351_v35, %v2530_v29  ;;  %v1053_v60 = vmul.f32 0.5, %v1037_v3 }
 0x1c3   :  { %v1137_v13 = vrot.slane %v1352_v63, %v2536_v36  ;;  %v1054_v6 = vmul.f32 0.5, %v1038_v17  ;;  %v1014_v34 = vpop.xlane.xlu0 %1013  ;;  %v1175_v17 = vadd.s32 4294967224, %v2514_v23 }
 0x1c4   :  { %v1132_v16 = vsel %vm1131_vm1, %v1130_v55, %v1125_v19  ;;  %v1353_v32 = vclamps-f32 %v1053_v60, 20.0  ;;  %v1039_v58 = vadd.f32 %v1014_v34, %v950_v24  ;;  %v1016_v35 = vpop.xlane.xlu1 %1015  ;;  %v2560_v24 = vsub.s32 %v1161_v5, %v2516_v0 }
 0x1c5   :  { %v1354_v3 = vclamps-f32 %v1054_v6, 20.0  ;;  %v1040_v61 = vadd.f32 %v1016_v35, %v2496_v14  ;;  %v1139_v55 = vsel %vm1138_vm2, %v1137_v13, %v1132_v16  ;;  %v2565_v35 = vsub.s32 %v1168_v54, %v2516_v0 }
 0x1c6   :  { %v1144_v31 = vrot.slane %v1353_v32, %v2539_v25  ;;  %v1055_v63 = vmul.f32 0.5, %v1039_v58 }
 0x1c7   :  { %v1151_v60 = vrot.slane %v1354_v3, %v2543_v20  ;;  %v1056_v19 = vmul.f32 0.5, %v1040_v61  ;;  %v1018_v6 = vpop.xlane.xlu0 %1017  ;;  %v2570_v3 = vsub.s32 %v1175_v17, %v2516_v0  ;;  %v1182_v61 = vadd.s32 4294967216, %v2514_v23 }
 0x1c8   :  { %v1146_v14 = vsel %vm1145_vm3, %v1144_v31, %v1139_v55  ;;  %v1355_v34 = vclamps-f32 %v1055_v63, 20.0  ;;  %v1041_v32 = vadd.f32 %v1018_v6, %v2500_v28  ;;  %v1020_v33 = vpop.xlane.xlu1 %1019 }
 0x1c9   :  { %v1356_v58 = vclamps-f32 %v1056_v19, 20.0  ;;  %v1042_v13 = vadd.f32 %v1020_v33, %v2498_v21  ;;  %v1153_v31 = vsel %vm1152_vm4, %v1151_v60, %v1146_v14  ;;  %v1189_v19 = vadd.s32 4294967208, %v2514_v23 }
 0x1ca   :  { %v1158_v16 = vrot.slane %v1355_v34, %v2554_v57  ;;  %v1057_v5 = vmul.f32 0.5, %v1041_v32  ;;  %v1196_v33 = vadd.s32 4294967200, %v2514_v23  ;;  %v2582_v14 = vsub.s32 %v1182_v61, %v2516_v0 }
 0x1cb   :  { %v1165_v28 = vrot.slane %v1356_v58, %v2560_v24  ;;  %v1058_v63 = vmul.f32 0.5, %v1042_v13  ;;  %v1022_v55 = vpop.xlane.xlu0 %1021  ;;  %v1203_v13 = vadd.s32 4294967192, %v2514_v23 }
 0x1cc   :  { %v1160_v54 = vsel %vm1159_vm5, %v1158_v16, %v1153_v31  ;;  %v1357_v21 = vclamps-f32 %v1057_v5, 20.0  ;;  %v1043_v6 = vadd.f32 %v1022_v55, %v2504_v30  ;;  %v1024_v34 = vpop.xlane.xlu1 %1023  ;;  %v2588_v30 = vsub.s32 %v1189_v19, %v2516_v0 }
 0x1cd   :  { %v1358_v17 = vclamps-f32 %v1058_v63, 20.0  ;;  %v1044_v32 = vadd.f32 %v1024_v34, %v2502_v22  ;;  %v1167_v16 = vsel %vm1166_vm6, %v1165_v28, %v1160_v54  ;;  %v2593_v34 = vsub.s32 %v1196_v33, %v2516_v0 }
 0x1ce   :  { %v1172_v60 = vrot.slane %v1357_v21, %v2565_v35  ;;  %v1059_v58 = vmul.f32 0.5, %v1043_v6 }
 0x1cf   :  { %v1179_v5 = vrot.slane %v1358_v17, %v2570_v3  ;;  %v1060_v31 = vmul.f32 0.5, %v1044_v32  ;;  %v1026_v63 = vpop.xlane.xlu0 %1025  ;;  %v2598_v17 = vsub.s32 %v1203_v13, %v2516_v0  ;;  %v1210_v32 = vadd.s32 4294967184, %v2514_v23 }
 0x1d0   :  { %v1174_v22 = vsel %vm1173_vm7, %v1172_v60, %v1167_v16  ;;  %v1359_v55 = vclamps-f32 %v1059_v58, 20.0  ;;  %v1045_v21 = vadd.f32 %v1026_v63, %v2508_v27  ;;  %v1028_v61 = vpop.xlane.xlu1 %1027 }
 0x1d1   :  { %v1360_v6 = vclamps-f32 %v1060_v31, 20.0  ;;  %v1046_v28 = vadd.f32 %v1028_v61, %v2506_v10  ;;  %v1181_v60 = vsel %vm1180_vm8, %v1179_v5, %v1174_v22  ;;  %v1217_v31 = vadd.s32 4294967176, %v2514_v23 }
 0x1d2   :  { %v1186_v54 = vrot.slane %v1359_v55, %v2582_v14  ;;  %v1061_v19 = vmul.f32 0.5, %v1045_v21  ;;  %v2609_v5 = vsub.s32 %v1210_v32, %v2516_v0 }
 0x1d3   :  { %v1193_v27 = vrot.slane %v1360_v6, %v2588_v30  ;;  %v1062_v58 = vmul.f32 0.5, %v1046_v28  ;;  %v1030_v16 = vpop.xlane.xlu0 %1029  ;;  %v2614_v28 = vsub.s32 %v1217_v31, %v2516_v0 }
 0x1d4   :  { %v1188_v33 = vsel %vm1187_vm9, %v1186_v54, %v1181_v60  ;;  %v1361_v10 = vclamps-f32 %v1061_v19, 20.0  ;;  %v1047_v63 = vadd.f32 %v1030_v16, %v2512_v8  ;;  %v1032_v55 = vpop.xlane.xlu1 %1031 }
 0x1d5   :  { %v1362_v13 = vclamps-f32 %v1062_v58, 20.0  ;;  %v1048_v21 = vadd.f32 %v1032_v55, %v2510_v2  ;;  %v1195_v6 = vsel %vm1194_vm10, %v1193_v27, %v1188_v33  ;;  %v2620_v2 = vld [vmem:[%s2780_s5] ss:$0 sm:$0xff] }
 0x1d6   :  { %v1200_v61 = vrot.slane %v1361_v10, %v2593_v34  ;;  %v1063_v22 = vmul.f32 0.5, %v1047_v63 }
 0x1d7   :  { %v1207_v23 = vrot.slane %v1362_v13, %v2598_v17  ;;  %v1064_v54 = vmul.f32 0.5, %v1048_v21 }
 0x1d8   :  { %v1202_v8 = vsel %vm1201_vm11, %v1200_v61, %v1195_v6  ;;  %v1363_v19 = vclamps-f32 %v1063_v22, 20.0 }
 0x1d9   :  { %v1364_v32 = vclamps-f32 %v1064_v54, 20.0  ;;  %v1209_v58 = vsel %vm1208_vm12, %v1207_v23, %v1202_v8 }
 0x1da   :  { %v1214_v60 = vrot.slane %v1363_v19, %v2609_v5  ;;  %v1813_v27 = vpop.f32.mrb[0].mxu1 }
 0x1db   :  { %v1221_v0 = vrot.slane %v1364_v32, %v2614_v28  ;;  %v592_v16 = vadd.f32 %v1813_v27, %v2620_v2  ;;  %v586_v31 = vpop.f32.mrb[1].mxu1 }
 0x1dc   :  { %v1216_v33 = vsel %vm1215_vm13, %v1214_v60, %v1209_v58  ;;  %v587_v10 = vadd.f32 %v2620_v2, %v586_v31 }
 0x1dd   :  { %v1223_v63 = vsel %vm1222_vm14, %v1221_v0, %v1216_v33  ;;  %v746_v55 = vsub.f32 %v592_v16, %v1496_v39 }
 0x1de   :  { %1225 = vst [vmem:[%s2781_s6] sm:$0x1] %v1223_v63  ;;  %v1816_v13 = vpop.f32.mrb[2].mxu1  ;;  %v745_v6 = vsub.f32 %v587_v10, %v1495_v12 }
 0x1df   :  { %v602_v21 = vadd.f32 %v1816_v13, %v2620_v2  ;;  %v596_v61 = vpop.f32.mrb[3].mxu1  ;;  %v778_v22 = vmul.f32 %v746_v55, %v746_v55 }
 0x1e0   :  { %v597_v23 = vadd.f32 %v2620_v2, %v596_v61  ;;  %v777_v32 = vmul.f32 %v745_v6, %v745_v6 }
 0x1e1   :  { %811 = vadd.xlane.f32.xlu0 %v778_v22  ;;  %v748_v54 = vsub.f32 %v602_v21, %v1500_v42 }
 0x1e2   :  { %v1819_v8 = vpop.f32.mrb[4].mxu1  ;;  %v747_v27 = vsub.f32 %v597_v23, %v1499_v40 }
 0x1e3   :  { %v612_v39 = vadd.f32 %v1819_v8, %v2620_v2  ;;  %v606_v19 = vpop.f32.mrb[5].mxu1  ;;  %v780_v60 = vmul.f32 %v748_v54, %v748_v54 }
 0x1e4   :  { %v607_v58 = vadd.f32 %v2620_v2, %v606_v19  ;;  %v779_v16 = vmul.f32 %v747_v27, %v747_v27 }
 0x1e5   :  { %809 = vadd.xlane.f32.xlu0 %v777_v32  ;;  %815 = vadd.xlane.f32.xlu1 %v780_v60  ;;  %v750_v31 = vsub.f32 %v612_v39, %v1504_v45  ;;  %v2804_v32 = vunpack.c.h.bf16 %v2150_v50 }
 0x1e6   :  { %v1822_v9 = vpop.f32.mrb[6].mxu1  ;;  %v749_v12 = vsub.f32 %v607_v58, %v1503_v43  ;;  %v2805_v58 = vunpack.c.l.bf16 %v2161_v53 }
 0x1e7   :  { %v622_v0 = vadd.f32 %v1822_v9, %v2620_v2  ;;  %v616_v42 = vpop.f32.mrb[7].mxu1  ;;  %v782_v43 = vmul.f32 %v750_v31, %v750_v31 }
 0x1e8   :  { %v617_v33 = vadd.f32 %v2620_v2, %v616_v42  ;;  %v781_v10 = vmul.f32 %v749_v12, %v749_v12  ;;  %v2806_v42 = vunpack.c.h.bf16 %v2161_v53 }
 0x1e9   :  { %813 = vadd.xlane.f32.xlu1 %v779_v16  ;;  %v752_v13 = vsub.f32 %v622_v0, %v1508_v48 }
 0x1ea   :  { %v1825_v38 = vpop.f32.mrb[8].mxu1  ;;  %817 = vadd.xlane.f32.xlu0 %v781_v10  ;;  %v751_v40 = vsub.f32 %v617_v33, %v1507_v46  ;;  %v2807_v10 = vunpack.c.l.bf16 %v2172_v56 }
 0x1eb   :  { %v632_v63 = vadd.f32 %v1825_v38, %v2620_v2  ;;  %v626_v55 = vpop.f32.mrb[9].mxu1  ;;  %v784_v46 = vmul.f32 %v752_v13, %v752_v13 }
 0x1ec   :  { %v627_v21 = vadd.f32 %v2620_v2, %v626_v55  ;;  %v783_v41 = vmul.f32 %v751_v40, %v751_v40 }
 0x1ed   :  { %819 = vadd.xlane.f32.xlu1 %v782_v43  ;;  %v754_v23 = vsub.f32 %v632_v63, %v1512_v51  ;;  %v2808_v43 = vunpack.c.h.bf16 %v2172_v56 }
 0x1ee   :  { %v1828_v45 = vpop.f32.mrb[10].mxu1  ;;  %821 = vadd.xlane.f32.xlu0 %v783_v41  ;;  %v753_v61 = vsub.f32 %v627_v21, %v1511_v49 }
 0x1ef   :  { %v642_v22 = vadd.f32 %v1828_v45, %v2620_v2  ;;  %v636_v6 = vpop.f32.mrb[11].mxu1  ;;  %v786_v49 = vmul.f32 %v754_v23, %v754_v23  ;;  %v2809_v45 = vunpack.c.l.bf16 %v2183_v59  ;;  %v2810_v23 = vunpack.c.h.bf16 %v2183_v59 }
 0x1f0   :  { %v637_v54 = vadd.f32 %v2620_v2, %v636_v6  ;;  %v785_v44 = vmul.f32 %v753_v61, %v753_v61 }
 0x1f1   :  { %823 = vadd.xlane.f32.xlu1 %v784_v46  ;;  %v756_v60 = vsub.f32 %v642_v22, %v2804_v32 }
 0x1f2   :  { %v1831_v48 = vpop.f32.mrb[12].mxu1  ;;  %825 = vadd.xlane.f32.xlu0 %v785_v44  ;;  %v755_v8 = vsub.f32 %v637_v54, %v1515_v52 }
 0x1f3   :  { %v652_v39 = vadd.f32 %v1831_v48, %v2620_v2  ;;  %v646_v19 = vpop.f32.mrb[13].mxu1  ;;  %v788_v52 = vmul.f32 %v756_v60, %v756_v60  ;;  %v2812_v60 = vunpack.c.h.bf16 %v2194_v62 }
 0x1f4   :  { %v647_v27 = vadd.f32 %v2620_v2, %v646_v19  ;;  %v787_v47 = vmul.f32 %v755_v8, %v755_v8  ;;  %v2811_v8 = vunpack.c.l.bf16 %v2194_v62 }
 0x1f5   :  { %827 = vadd.xlane.f32.xlu1 %v786_v49  ;;  %v758_v16 = vsub.f32 %v652_v39, %v2806_v42  ;;  %v2814_v42 = vunpack.c.h.bf16 %v2205_v1 }
 0x1f6   :  { %v1834_v51 = vpop.f32.mrb[14].mxu1  ;;  %829 = vadd.xlane.f32.xlu0 %v787_v47  ;;  %v757_v9 = vsub.f32 %v647_v27, %v2805_v58  ;;  %v2813_v58 = vunpack.c.l.bf16 %v2205_v1 }
 0x1f7   :  { %v662_v12 = vadd.f32 %v1834_v51, %v2620_v2  ;;  %v656_v0 = vpop.f32.mrb[15].mxu1  ;;  %v790_v55 = vmul.f32 %v758_v16, %v758_v16 }
 0x1f8   :  { %v657_v31 = vadd.f32 %v2620_v2, %v656_v0  ;;  %v789_v50 = vmul.f32 %v757_v9, %v757_v9 }
 0x1f9   :  { %831 = vadd.xlane.f32.xlu1 %v788_v52  ;;  %v760_v13 = vsub.f32 %v662_v12, %v2808_v43 }
 0x1fa   :  { %v1837_v33 = vpop.f32.mrb[16].mxu1  ;;  %833 = vadd.xlane.f32.xlu0 %v789_v50  ;;  %v759_v38 = vsub.f32 %v657_v31, %v2807_v10 }
 0x1fb   :  { %v672_v40 = vadd.f32 %v1837_v33, %v2620_v2  ;;  %v666_v63 = vpop.f32.mrb[17].mxu1  ;;  %v792_v46 = vmul.f32 %v760_v13, %v760_v13  ;;  %v2815_v33 = vunpack.c.l.bf16 %v2216_v4 }
 0x1fc   :  { %v667_v21 = vadd.f32 %v2620_v2, %v666_v63  ;;  %v791_v53 = vmul.f32 %v759_v38, %v759_v38 }
 0x1fd   :  { %835 = vadd.xlane.f32.xlu1 %v790_v55  ;;  %v762_v54 = vsub.f32 %v672_v40, %v2810_v23  ;;  %v2816_v55 = vunpack.c.h.bf16 %v2216_v4 }
 0x1fe   :  { %v1840_v41 = vpop.f32.mrb[18].mxu1  ;;  %837 = vadd.xlane.f32.xlu0 %v791_v53  ;;  %v761_v61 = vsub.f32 %v667_v21, %v2809_v45  ;;  %v2817_v53 = vunpack.c.l.bf16 %v2227_v7 }
 0x1ff   :  { %v682_v22 = vadd.f32 %v1840_v41, %v2620_v2  ;;  %v676_v6 = vpop.f32.mrb[19].mxu1  ;;  %v794_v32 = vmul.f32 %v762_v54, %v762_v54 }
 0x200   :  { %v677_v44 = vadd.f32 %v2620_v2, %v676_v6  ;;  %v793_v56 = vmul.f32 %v761_v61, %v761_v61  ;;  %v2818_v6 = vunpack.c.h.bf16 %v2227_v7 }
 0x201   :  { %839 = vadd.xlane.f32.xlu1 %v792_v46  ;;  %v764_v27 = vsub.f32 %v682_v22, %v2812_v60 }
 0x202   :  { %v1843_v48 = vpop.f32.mrb[20].mxu1  ;;  %841 = vadd.xlane.f32.xlu0 %v793_v56  ;;  %v763_v39 = vsub.f32 %v677_v44, %v2811_v8  ;;  %v2819_v44 = vunpack.c.l.bf16 %v2238_v11 }
 0x203   :  { %v692_v19 = vadd.f32 %v1843_v48, %v2620_v2  ;;  %v686_v49 = vpop.f32.mrb[21].mxu1  ;;  %v796_v52 = vmul.f32 %v764_v27, %v764_v27  ;;  %v2821_v27 = vunpack.c.l.bf16 %v2249_v15 }
 0x204   :  { %v687_v47 = vadd.f32 %v2620_v2, %v686_v49  ;;  %v795_v59 = vmul.f32 %v763_v39, %v763_v39 }
 0x205   :  { %843 = vadd.xlane.f32.xlu1 %v794_v32  ;;  %v766_v16 = vsub.f32 %v692_v19, %v2814_v42  ;;  %v2820_v19 = vunpack.c.h.bf16 %v2238_v11 }
 0x206   :  { %v1846_v51 = vpop.f32.mrb[22].mxu1  ;;  %845 = vadd.xlane.f32.xlu0 %v795_v59  ;;  %v765_v9 = vsub.f32 %v687_v47, %v2813_v58 }
 0x207   :  { %v702_v12 = vadd.f32 %v1846_v51, %v2620_v2  ;;  %v696_v0 = vpop.f32.mrb[23].mxu1  ;;  %v798_v63 = vmul.f32 %v766_v16, %v766_v16 }
 0x208   :  { %v697_v31 = vadd.f32 %v2620_v2, %v696_v0  ;;  %v797_v62 = vmul.f32 %v765_v9, %v765_v9  ;;  %v2822_v9 = vunpack.c.h.bf16 %v2249_v15 }
 0x209   :  { %847 = vadd.xlane.f32.xlu1 %v796_v52  ;;  %v768_v43 = vsub.f32 %v702_v12, %v2816_v55  ;;  %v2823_v52 = vunpack.c.l.bf16 %v2260_v18 }
 0x20a   :  { %v1849_v50 = vpop.f32.mrb[24].mxu1  ;;  %849 = vadd.xlane.f32.xlu0 %v797_v62  ;;  %v767_v10 = vsub.f32 %v697_v31, %v2815_v33  ;;  %v2824_v31 = vunpack.c.h.bf16 %v2260_v18 }
 0x20b   :  { %v712_v38 = vadd.f32 %v1849_v50, %v2620_v2  ;;  %v706_v40 = vpop.f32.mrb[25].mxu1  ;;  %v800_v22 = vmul.f32 %v768_v43, %v768_v43 }
 0x20c   :  { %v707_v13 = vadd.f32 %v2620_v2, %v706_v40  ;;  %v799_v1 = vmul.f32 %v767_v10, %v767_v10 }
 0x20d   :  { %851 = vadd.xlane.f32.xlu1 %v798_v63  ;;  %v770_v46 = vsub.f32 %v712_v38, %v2818_v6 }
 0x20e   :  { %v1852_v21 = vpop.f32.mrb[26].mxu1  ;;  %853 = vadd.xlane.f32.xlu0 %v799_v1  ;;  %v769_v41 = vsub.f32 %v707_v13, %v2817_v53 }
 0x20f   :  { %v722_v45 = vadd.f32 %v1852_v21, %v2620_v2  ;;  %v716_v61 = vpop.f32.mrb[27].mxu1  ;;  %v802_v39 = vmul.f32 %v770_v46, %v770_v46 }
 0x210   :  { %v717_v23 = vadd.f32 %v2620_v2, %v716_v61  ;;  %v801_v4 = vmul.f32 %v769_v41, %v769_v41 }
 0x211   :  { %855 = vadd.xlane.f32.xlu1 %v800_v22  ;;  %v772_v49 = vsub.f32 %v722_v45, %v2820_v19 }
 0x212   :  { %v1855_v54 = vpop.f32.mrb[28].mxu1  ;;  %857 = vadd.xlane.f32.xlu0 %v801_v4  ;;  %v771_v56 = vsub.f32 %v717_v23, %v2819_v44 }
 0x213   :  { %v732_v48 = vadd.f32 %v1855_v54, %v2620_v2  ;;  %v726_v8 = vpop.f32.mrb[29].mxu1  ;;  %v804_v58 = vmul.f32 %v772_v49, %v772_v49 }
 0x214   :  { %v727_v32 = vadd.f32 %v2620_v2, %v726_v8  ;;  %v803_v7 = vmul.f32 %v771_v56, %v771_v56 }
 0x215   :  { %859 = vadd.xlane.f32.xlu1 %v802_v39  ;;  %v774_v12 = vsub.f32 %v732_v48, %v2822_v9 }
 0x216   :  { %v1858_v60 = vpop.f32.mrb[30].mxu1  ;;  %861 = vadd.xlane.f32.xlu0 %v803_v7  ;;  %v773_v47 = vsub.f32 %v727_v32, %v2821_v27 }
 0x217   :  { %v742_v59 = vadd.f32 %v1858_v60, %v2620_v2  ;;  %v736_v51 = vpop.f32.mrb[31].mxu1  ;;  %v806_v16 = vmul.f32 %v774_v12, %v774_v12 }
 0x218   :  { %v737_v0 = vadd.f32 %v2620_v2, %v736_v51  ;;  %v805_v11 = vmul.f32 %v773_v47, %v773_v47 }
 0x219   :  { %863 = vadd.xlane.f32.xlu1 %v804_v58  ;;  %v776_v62 = vsub.f32 %v742_v59, %v2824_v31 }
 0x21a   :  { %865 = vadd.xlane.f32.xlu0 %v805_v11  ;;  %v775_v42 = vsub.f32 %v737_v0, %v2823_v52 }
 0x21b   :  { %v808_v33 = vmul.f32 %v776_v62, %v776_v62 }
 0x21c   :  { %v807_v50 = vmul.f32 %v775_v42, %v775_v42 }
 0x21d   :  { %867 = vadd.xlane.f32.xlu1 %v806_v16 }
 0x21e   :  { %869 = vadd.xlane.f32.xlu0 %v807_v50 }
 0x221   :  { %871 = vadd.xlane.f32.xlu1 %v808_v33 }
 0x26e   :  { %v812_v10 = vpop.xlane.xlu0 %811 }
 0x26f   :  { %v874_v4 = vmul.f32 0.0625, %v812_v10 }
 0x272   :  { %v810_v15 = vpop.xlane.xlu0 %809  ;;  %v816_v38 = vpop.xlane.xlu1 %815 }
 0x273   :  { %v873_v46 = vmul.f32 0.0625, %v810_v15  ;;  %v876_v32 = vmul.f32 0.0625, %v816_v38 }
 0x276   :  { %v814_v40 = vpop.xlane.xlu1 %813 }
 0x277   :  { %v818_v2 = vpop.xlane.xlu0 %817  ;;  %v875_v48 = vmul.f32 0.0625, %v814_v40 }
 0x278   :  { %v877_v59 = vmul.f32 0.0625, %v818_v2 }
 0x27a   :  { %v820_v63 = vpop.xlane.xlu1 %819 }
 0x27b   :  { %v822_v55 = vpop.xlane.xlu0 %821  ;;  %v878_v52 = vmul.f32 0.0625, %v820_v63 }
 0x27c   :  { %v879_v62 = vmul.f32 0.0625, %v822_v55 }
 0x27e   :  { %v824_v43 = vpop.xlane.xlu1 %823 }
 0x27f   :  { %v826_v13 = vpop.xlane.xlu0 %825  ;;  %v880_v38 = vmul.f32 0.0625, %v824_v43 }
 0x282   :  { %v828_v1 = vpop.xlane.xlu1 %827 }
 0x283   :  { %v830_v21 = vpop.xlane.xlu0 %829 }
 0x286   :  { %v2726_v53 = vpop.xlane.xlu1 %831 }
 0x287   :  { %v2728_v18 = vpop.xlane.xlu0 %833 }
 0x28a   :  { %v2730_v41 = vpop.xlane.xlu1 %835 }
 0x28b   :  { %v2732_v45 = vpop.xlane.xlu0 %837 }
 0x28e   :  { %v2734_v61 = vpop.xlane.xlu1 %839 }
 0x28f   :  { %v842_v22 = vpop.xlane.xlu0 %841 }
 0x290   :  { %v889_v6 = vmul.f32 0.0625, %v842_v22  ;;  %v881_v22 = vmul.f32 0.0625, %v826_v13 }
 0x292   :  { %v844_v23 = vpop.xlane.xlu1 %843  ;;  %v1226_v54 = vadd.f32 %v889_v6, %v873_v46 }
 0x293   :  { %v890_v44 = vmul.f32 0.0625, %v844_v23  ;;  %v846_v56 = vpop.xlane.xlu0 %845 }
 0x294   :  { %v891_v8 = vmul.f32 0.0625, %v846_v56  ;;  %v1261_v7 = vrot.slane %v1226_v54, %v2525_v26  ;;  %v882_v54 = vmul.f32 0.0625, %v828_v1 }
 0x295   :  { %v1227_v39 = vadd.f32 %v890_v44, %v874_v4 }
 0x296   :  { %v1228_v19 = vadd.f32 %v891_v8, %v875_v48  ;;  %v848_v49 = vpop.xlane.xlu1 %847  ;;  %v883_v48 = vmul.f32 0.0625, %v830_v21 }
 0x297   :  { %v1265_v60 = vrot.slane %v1227_v39, %v2521_v37  ;;  %v892_v27 = vmul.f32 0.0625, %v848_v49  ;;  %v850_v47 = vpop.xlane.xlu0 %849 }
 0x298   :  { %v1270_v51 = vrot.slane %v1228_v19, %v2530_v29  ;;  %v893_v58 = vmul.f32 0.0625, %v850_v47 }
 0x299   :  { %v1266_v9 = vsel %vm1124_vm0, %v1265_v60, %v1261_v7  ;;  %v1229_v12 = vadd.f32 %v892_v27, %v876_v32  ;;  %v884_v32 = vmul.f32 0.0625, %v2726_v53 }
 0x29a   :  { %v1230_v0 = vadd.f32 %v893_v58, %v877_v59  ;;  %v852_v11 = vpop.xlane.xlu1 %851  ;;  %v1271_v26 = vsel %vm1131_vm1, %v1270_v51, %v1266_v9  ;;  %v886_v9 = vmul.f32 0.0625, %v2730_v41 }
 0x29b   :  { %v1275_v42 = vrot.slane %v1229_v12, %v2536_v36  ;;  %v894_v16 = vmul.f32 0.0625, %v852_v11  ;;  %v854_v31 = vpop.xlane.xlu0 %853 }
 0x29c   :  { %v1280_v37 = vrot.slane %v1230_v0, %v2539_v25  ;;  %v895_v50 = vmul.f32 0.0625, %v854_v31  ;;  %v887_v0 = vmul.f32 0.0625, %v2732_v45 }
 0x29d   :  { %v1276_v33 = vsel %vm1138_vm2, %v1275_v42, %v1271_v26  ;;  %v1231_v29 = vadd.f32 %v894_v16, %v878_v52 }
 0x29e   :  { %v1232_v10 = vadd.f32 %v895_v50, %v879_v62  ;;  %v856_v15 = vpop.xlane.xlu1 %855  ;;  %v1281_v36 = vsel %vm1145_vm3, %v1280_v37, %v1276_v33  ;;  %v888_v62 = vmul.f32 0.0625, %v2734_v61 }
 0x29f   :  { %v1285_v40 = vrot.slane %v1231_v29, %v2543_v20  ;;  %v896_v2 = vmul.f32 0.0625, %v856_v15  ;;  %v858_v63 = vpop.xlane.xlu0 %857 }
 0x2a0   :  { %v1290_v55 = vrot.slane %v1232_v10, %v2554_v57  ;;  %v897_v6 = vmul.f32 0.0625, %v858_v63 }
 0x2a1   :  { %v1286_v46 = vsel %vm1152_vm4, %v1285_v40, %v1281_v36  ;;  %v1233_v25 = vadd.f32 %v896_v2, %v880_v38 }
 0x2a2   :  { %v1234_v23 = vadd.f32 %v897_v6, %v881_v22  ;;  %v860_v4 = vpop.xlane.xlu1 %859  ;;  %v1291_v20 = vsel %vm1159_vm5, %v1290_v55, %v1286_v46 }
 0x2a3   :  { %v1295_v44 = vrot.slane %v1233_v25, %v2560_v24  ;;  %v898_v56 = vmul.f32 0.0625, %v860_v4  ;;  %v862_v43 = vpop.xlane.xlu0 %861  ;;  %v885_v24 = vmul.f32 0.0625, %v2728_v18 }
 0x2a4   :  { %v1300_v13 = vrot.slane %v1234_v23, %v2565_v35  ;;  %v899_v8 = vmul.f32 0.0625, %v862_v43 }
 0x2a5   :  { %v1296_v39 = vsel %vm1166_vm6, %v1295_v44, %v1291_v20  ;;  %v1235_v57 = vadd.f32 %v898_v56, %v882_v54 }
 0x2a6   :  { %v1236_v19 = vadd.f32 %v899_v8, %v883_v48  ;;  %v864_v49 = vpop.xlane.xlu1 %863  ;;  %v1301_v21 = vsel %vm1173_vm7, %v1300_v13, %v1296_v39 }
 0x2a7   :  { %v1305_v7 = vrot.slane %v1235_v57, %v2570_v3  ;;  %v900_v1 = vmul.f32 0.0625, %v864_v49  ;;  %v866_v60 = vpop.xlane.xlu0 %865 }
 0x2a8   :  { %v1310_v27 = vrot.slane %v1236_v19, %v2582_v14  ;;  %v901_v47 = vmul.f32 0.0625, %v866_v60 }
 0x2a9   :  { %v1306_v35 = vsel %vm1180_vm8, %v1305_v7, %v1301_v21  ;;  %v1237_v59 = vadd.f32 %v900_v1, %v884_v32 }
 0x2aa   :  { %v1238_v51 = vadd.f32 %v901_v47, %v885_v24  ;;  %v868_v58 = vpop.xlane.xlu1 %867  ;;  %v1311_v18 = vsel %vm1187_vm9, %v1310_v27, %v1306_v35 }
 0x2ab   :  { %v1315_v53 = vrot.slane %v1237_v59, %v2588_v30  ;;  %v902_v12 = vmul.f32 0.0625, %v868_v58  ;;  %v870_v3 = vpop.xlane.xlu0 %869 }
 0x2ac   :  { %v1320_v11 = vrot.slane %v1238_v51, %v2593_v34  ;;  %v903_v52 = vmul.f32 0.0625, %v870_v3 }
 0x2ad   :  { %v1316_v14 = vsel %vm1194_vm10, %v1315_v53, %v1311_v18  ;;  %v1239_v42 = vadd.f32 %v902_v12, %v886_v9 }
 0x2ae   :  { %v1240_v16 = vadd.f32 %v903_v52, %v887_v0  ;;  %v872_v31 = vpop.xlane.xlu1 %871  ;;  %v1321_v30 = vsel %vm1201_vm11, %v1320_v11, %v1316_v14 }
 0x2af   :  { %v1325_v41 = vrot.slane %v1239_v42, %v2598_v17  ;;  %v904_v26 = vmul.f32 0.0625, %v872_v31 }
 0x2b0   :  { %v1330_v37 = vrot.slane %v1240_v16, %v2609_v5 }
 0x2b1   :  { %v1326_v45 = vsel %vm1208_vm12, %v1325_v41, %v1321_v30  ;;  %v1241_v50 = vadd.f32 %v904_v26, %v888_v62 }
 0x2b2   :  { %v1331_v33 = vsel %vm1215_vm13, %v1330_v37, %v1326_v45 }
 0x2b3   :  { %v1335_v34 = vrot.slane %v1241_v50, %v2614_v28 }
 0x2b5   :  { %v1336_v29 = vsel %vm1222_vm14, %v1335_v34, %v1331_v33 }
 0x2b6   :  { %1338 = vst [vmem:[%s2782_s7] sm:$0x1] %v1336_v29 }

</bundles_post_ra>
